<compile_context>
chip_gen: v6e
topology: v6e:2x2x1
jax: 0.10.0
libtpu: 0.0.40
codegen_flags: <defaults>
</compile_context>

<pallas_src>
import functools

import jax
import jax.numpy as jnp
from jax.experimental import pallas as pl
from jax.experimental.pallas import tpu as pltpu


# ---------------------------------------------------------------------------
# Fused kernel: embed (p + linear(p)) at layer 0, then one TFLayer per inner
# grid step; the (S, C) activation slab is resident in VMEM scratch.
# ---------------------------------------------------------------------------
def fused_tfblock_kernel(x_ref, emb_w_ref, emb_b_ref, w_ref, vec_ref,
                         o_ref, h_ref, *, num_heads):
    l = pl.program_id(1)
    num_layers = pl.num_programs(1)

    # --- layer 0: load this batch element's token slab and apply the embed
    #     Linear (p + linear(p)); result becomes the resident activation. ---
    @pl.when(l == 0)
    def _():
        x = x_ref[0]                                               # (S, C) f32
        e = jnp.dot(x.astype(jnp.bfloat16), emb_w_ref[...],
                    preferred_element_type=jnp.float32) + emb_b_ref[...]
        h_ref[...] = x + e

    h = h_ref[...]                                                 # (S, C) f32
    S, C = h.shape
    Dh = C // num_heads

    # Per-layer weights: (C, 6C) bf16 = [Wq_eff | Wk_eff | Wv_eff | Wout | Wfc1 | Wfc2]
    W = w_ref[0]
    w_out = W[:, 3 * C:4 * C]
    w_fc1 = W[:, 4 * C:5 * C]
    w_fc2 = W[:, 5 * C:6 * C]
    # Per-layer vectors: (8, C) f32 = [ln1_g, ln1_b, bq, bk, bv, out_b, ln2_g, ln2_b]
    vec = vec_ref[0]
    ln1_g, ln1_b = vec[0:1], vec[1:2]
    b_q, b_k, b_v = vec[2:3], vec[3:4], vec[4:5]
    out_b = vec[5:6]
    ln2_g, ln2_b = vec[6:7], vec[7:8]

    def layernorm(t, g, b):
        mu = jnp.mean(t, axis=-1, keepdims=True)
        var = jnp.mean((t - mu) ** 2, axis=-1, keepdims=True)
        return (t - mu) * jax.lax.rsqrt(var + 1e-5) * g + b

    def bdot(a, b):                                  # bf16 MXU matmul, f32 acc
        return jnp.dot(a.astype(jnp.bfloat16), b.astype(jnp.bfloat16),
                       preferred_element_type=jnp.float32)

    # --- attention: ln1 -> fused q/k/v projection (single wide MXU matmul)
    #     -> per-head SDPA -> out_proj accumulated into the residual ---
    ln1 = layernorm(h, ln1_g, ln1_b)
    qkv = jnp.dot(ln1.astype(jnp.bfloat16), W[:, 0:3 * C],
                  preferred_element_type=jnp.float32)              # (S, 3C)
    q = qkv[:, 0:C] + b_q                 # query scale pre-folded into Wq/bq
    k = qkv[:, C:2 * C] + b_k
    v = qkv[:, 2 * C:3 * C] + b_v

    attn_out = h + out_b                  # residual + out_proj bias up front
    for hh in range(num_heads):           # static unroll over heads
        sl = slice(hh * Dh, (hh + 1) * Dh)
        logits = jax.lax.dot_general(      # (S, S) = q_h @ k_h^T
            q[:, sl].astype(jnp.bfloat16), k[:, sl].astype(jnp.bfloat16),
            (((1,), (1,)), ((), ())), preferred_element_type=jnp.float32)
        logits = logits - jnp.max(logits, axis=-1, keepdims=True)
        e = jnp.exp(logits)
        p = e * pl.reciprocal(jnp.sum(e, axis=-1, keepdims=True), approx=True)
        ctx = bdot(p, v[:, sl])                          # (S, Dh)
        attn_out = attn_out + bdot(ctx, w_out[sl, :])    # accumulate out_proj
    ma = attn_out

    # --- MLP: ln2 -> fc1 -> fc2, residual taken from ln2 (as in the module) ---
    ln2 = layernorm(ma, ln2_g, ln2_b)
    h1 = bdot(ln2, w_fc1)
    h_new = bdot(h1, w_fc2) + ln2
    h_ref[...] = h_new

    @pl.when(l == num_layers - 1)
    def _():
        o_ref[0] = h_new.astype(o_ref.dtype)


# ---------------------------------------------------------------------------
# Host-side weight prep + fused pallas_call wrapper
# ---------------------------------------------------------------------------
def _fold_and_pack_params(layer_params, C, num_heads):
    """Fold q/k/v Linears + query scale into the MHA in_proj; pack per layer."""
    scale = 1.0 / ((C // num_heads) ** 0.5)
    wmats, vecs = [], []
    for (ln1_g, ln1_b, wq, wk, wv, in_w, in_b, out_w, out_b,
         ln2_g, ln2_b, wfc1, wfc2) in layer_params:
        wq_eff = (wq @ in_w[:, 0:C]) * scale     # Linear ∘ Linear composes exactly
        wk_eff = wk @ in_w[:, C:2 * C]
        wv_eff = wv @ in_w[:, 2 * C:3 * C]
        b_q = in_b[:, 0:C] * scale
        b_k = in_b[:, C:2 * C]
        b_v = in_b[:, 2 * C:3 * C]
        # Pack the six (C, C) mats side-by-side -> (C, 6C) so q/k/v is one matmul
        wmats.append(jnp.concatenate(
            [wq_eff, wk_eff, wv_eff, out_w, wfc1, wfc2], axis=1))
        vecs.append(jnp.concatenate(
            [ln1_g, ln1_b, b_q, b_k, b_v, out_b, ln2_g, ln2_b], axis=0))
    wmats = jnp.stack(wmats).astype(jnp.bfloat16)    # (L, C, 6C) bf16
    vecs = jnp.stack(vecs).astype(jnp.float32)       # (L, 8, C)   f32
    return wmats, vecs


def tf_block_forward(x_nchw, linear_w_t, linear_b, layer_params, num_heads):
    B, C, W, H = x_nchw.shape
    S = W * H
    L = len(layer_params)
    # (B, C, W, H) -> (B, C, S) -> (B, S, C)  (same token order as torch flatten(2))
    p = x_nchw.reshape(B, C, S).transpose(0, 2, 1)
    wmats, vecs = _fold_and_pack_params(layer_params, C, num_heads)

    kernel = functools.partial(fused_tfblock_kernel, num_heads=num_heads)
    out = pl.pallas_call(
        kernel,
        out_shape=jax.ShapeDtypeStruct((B, S, C), p.dtype),
        grid=(B, L),                      # batch outer (parallel), layers inner
        in_specs=[
            pl.BlockSpec((1, S, C), lambda b, l: (b, 0, 0)),        # tokens
            pl.BlockSpec((C, C), lambda b, l: (0, 0)),              # embed W^T (bf16)
            pl.BlockSpec((1, C), lambda b, l: (0, 0)),              # embed bias
            pl.BlockSpec((1, C, 6 * C), lambda b, l: (l, 0, 0)),    # per-layer mats
            pl.BlockSpec((1, 8, C), lambda b, l: (l, 0, 0)),        # per-layer vecs
        ],
        out_specs=pl.BlockSpec((1, S, C), lambda b, l: (b, 0, 0)),
        scratch_shapes=[pltpu.VMEM((S, C), jnp.float32)],           # resident slab
        compiler_params=pltpu.CompilerParams(
            dimension_semantics=("parallel", "arbitrary")),
    )(p, linear_w_t.astype(jnp.bfloat16), linear_b, wmats, vecs)

    return out.transpose(0, 2, 1).reshape(B, C, W, H)


# ---------------------------------------------------------------------------
# Pure-JAX reference on the *unfolded* parameters (validates the host-side
# q/k/v -> in_proj + scale fold as well as the kernel).  Matmuls mirror the
# kernel's MXU precision policy (bf16 inputs, f32 accumulation) so the check
# isolates structural correctness.
# ---------------------------------------------------------------------------
def _layernorm_ref(v, g, b):
    mu = jnp.mean(v, axis=-1, keepdims=True)
    var = jnp.mean((v - mu) ** 2, axis=-1, keepdims=True)
    return (v - mu) / jnp.sqrt(var + 1e-5) * g + b


def _bdot_ref(a, b):
    return jnp.matmul(a.astype(jnp.bfloat16), b.astype(jnp.bfloat16),
                      preferred_element_type=jnp.float32)


def tf_block_reference(x_nchw, linear_w_t, linear_b, layer_params, num_heads):
    B, C, W, H = x_nchw.shape
    S = W * H
    Dh = C // num_heads
    p = x_nchw.reshape(B, C, S).transpose(0, 2, 1)            # (B, S, C)
    h = p + (_bdot_ref(p, linear_w_t) + linear_b)
    for (ln1_g, ln1_b, wq, wk, wv, in_w, in_b, out_w, out_b,
         ln2_g, ln2_b, wfc1, wfc2) in layer_params:
        ln1 = _layernorm_ref(h, ln1_g, ln1_b)
        q, k, v = _bdot_ref(ln1, wq), _bdot_ref(ln1, wk), _bdot_ref(ln1, wv)
        Q = _bdot_ref(q, in_w[:, 0:C]) + in_b[:, 0:C]
        K = _bdot_ref(k, in_w[:, C:2 * C]) + in_b[:, C:2 * C]
        V = _bdot_ref(v, in_w[:, 2 * C:3 * C]) + in_b[:, 2 * C:3 * C]
        Qh = Q.reshape(B, S, num_heads, Dh).transpose(0, 2, 1, 3) * (1.0 / (Dh ** 0.5))
        Kh = K.reshape(B, S, num_heads, Dh).transpose(0, 2, 1, 3)
        Vh = V.reshape(B, S, num_heads, Dh).transpose(0, 2, 1, 3)
        logits = jnp.einsum("bhsd,bhtd->bhst",
                            Qh.astype(jnp.bfloat16), Kh.astype(jnp.bfloat16),
                            preferred_element_type=jnp.float32)
        attn = jax.nn.softmax(logits, axis=-1)
        ctx = jnp.einsum("bhst,bhtd->bhsd",
                         attn.astype(jnp.bfloat16), Vh.astype(jnp.bfloat16),
                         preferred_element_type=jnp.float32)
        ctx = ctx.transpose(0, 2, 1, 3).reshape(B, S, C)
        ma = _bdot_ref(ctx, out_w) + out_b + h
        ln2 = _layernorm_ref(ma, ln2_g, ln2_b)
        h = _bdot_ref(_bdot_ref(ln2, wfc1), wfc2) + ln2
    return h.transpose(0, 2, 1).reshape(B, C, W, H)


# ---------------------------------------------------------------------------
# Deterministic parameter init (unfolded, PyTorch-equivalent layout; weights
# are stored pre-transposed as W^T so y = x @ W^T matches nn.Linear)
# ---------------------------------------------------------------------------
def init_tflayer_params(key, c):
    ks = jax.random.split(key, 13)
    lin = lambda k, din, dout: 0.1 * jax.random.normal(k, (din, dout), jnp.float32)
    return (
        1.0 + 0.1 * jax.random.normal(ks[0], (1, c), jnp.float32),   # ln1 gamma
        0.1 * jax.random.normal(ks[1], (1, c), jnp.float32),         # ln1 beta
        lin(ks[2], c, c), lin(ks[3], c, c), lin(ks[4], c, c),         # Wq^T Wk^T Wv^T
        lin(ks[5], c, 3 * c),                                         # in_proj W^T
        0.1 * jax.random.normal(ks[6], (1, 3 * c), jnp.float32),      # in_proj b
        lin(ks[7], c, c),                                             # out_proj W^T
        0.1 * jax.random.normal(ks[8], (1, c), jnp.float32),          # out_proj b
        1.0 + 0.1 * jax.random.normal(ks[9], (1, c), jnp.float32),    # ln2 gamma
        0.1 * jax.random.normal(ks[10], (1, c), jnp.float32),         # ln2 beta
        lin(ks[11], c, c), lin(ks[12], c, c),                         # Wfc1^T Wfc2^T
    )


if __name__ == "__main__":
    # c1 == c2 == 128 -> conv branch is None; lane-dense (C = 128) token slab,
    # S = 64 tokens (sublane-aligned), still small enough to be instantaneous.
    B, C, W, H = 2, 128, 8, 8
    num_heads, num_layers = 4, 2

    key = jax.random.PRNGKey(0)
    kx, klin_w, klin_b, klayers = jax.random.split(key, 4)

    x = jax.random.normal(kx, (B, C, W, H), jnp.float32)               # NCHW input
    linear_w_t = 0.1 * jax.random.normal(klin_w, (C, C), jnp.float32)  # Linear W^T
    linear_b = 0.1 * jax.random.normal(klin_b, (1, C), jnp.float32)    # Linear bias
    layer_params = [init_tflayer_params(k, C)
                    for k in jax.random.split(klayers, num_layers)]

    out = tf_block_forward(x, linear_w_t, linear_b, layer_params, num_heads)
    out = jax.block_until_ready(out)

    ref = tf_block_reference(x, linear_w_t, linear_b, layer_params, num_heads)
    assert out.shape == (B, C, W, H)
    # Tolerance covers bf16-MXU rounding of the folded q/k/v weights and the
    # approximate-reciprocal softmax; structural bugs produce O(0.3+) errors.
    assert jnp.allclose(out, ref, rtol=5e-2, atol=5e-2), "mismatch vs JAX reference"

    print("KERNEL_OK")
</pallas_src>

<mosaic_0001>
module attributes {stable_mosaic.version = 11 : i64} {
  func.func @fused_tfblock_kernel(%arg0: i32, %arg1: i32, %arg2: memref<1x64x128xf32, #tpu.memory_space<vmem>>, %arg3: memref<128x128xbf16, #tpu.memory_space<vmem>>, %arg4: memref<1x128xf32, #tpu.memory_space<vmem>>, %arg5: memref<1x128x768xbf16, #tpu.memory_space<vmem>>, %arg6: memref<1x8x128xf32, #tpu.memory_space<vmem>>, %arg7: memref<1x64x128xf32, #tpu.memory_space<vmem>>, %arg8: memref<64x128xf32, #tpu.memory_space<vmem>>) attributes {dimension_semantics = [#tpu.dimension_semantics<parallel>, #tpu.dimension_semantics<arbitrary>], iteration_bounds = array<i64: 2, 2>, scalar_prefetch = 0 : i64, scratch_operands = 1 : i64, tpu.core_type = #tpu.core_type<tc>, window_params = [{transform_indices = @transform_0, window_bounds = array<i64: 1, 64, 128>}, {pipeline_mode = #tpu.pipeline_mode<synchronous>, transform_indices = @transform_1, window_bounds = array<i64: 128, 128>}, {pipeline_mode = #tpu.pipeline_mode<synchronous>, transform_indices = @transform_2, window_bounds = array<i64: 1, 128>}, {transform_indices = @transform_3, window_bounds = array<i64: 1, 128, 768>}, {transform_indices = @transform_4, window_bounds = array<i64: 1, 8, 128>}, {transform_indices = @transform_5, window_bounds = array<i64: 1, 64, 128>}]} {
    %c0_i32 = arith.constant 0 : i32
    %0 = arith.cmpi eq, %arg1, %c0_i32 : i32
    %1 = arith.extui %0 : i1 to i32
    %c0_i32_0 = arith.constant 0 : i32
    %2 = arith.cmpi ne, %1, %c0_i32_0 : i32
    scf.if %2 {
      %c0_43 = arith.constant 0 : index
      %c0_44 = arith.constant 0 : index
      %c0_45 = arith.constant 0 : index
      %178 = vector.load %arg2[%c0_43, %c0_44, %c0_45] : memref<1x64x128xf32, #tpu.memory_space<vmem>>, vector<1x64x128xf32>
      %179 = vector.shape_cast %178 : vector<1x64x128xf32> to vector<64x128xf32>
      %180 = arith.truncf %179 : vector<64x128xf32> to vector<64x128xbf16>
      %c0_46 = arith.constant 0 : index
      %c0_47 = arith.constant 0 : index
      %181 = vector.load %arg3[%c0_46, %c0_47] : memref<128x128xbf16, #tpu.memory_space<vmem>>, vector<128x128xbf16>
      %cst_48 = arith.constant dense<0.000000e+00> : vector<64x128xf32>
      %182 = tpu.matmul %180, %181, %cst_48 {dimension_numbers = #tpu.dot_dimension_numbers<[1], [0], [0], [1], [0, 0, 1, 1], [], []>} : vector<64x128xbf16>, vector<128x128xbf16>, vector<64x128xf32> -> vector<64x128xf32>
      %c0_49 = arith.constant 0 : index
      %c0_50 = arith.constant 0 : index
      %183 = vector.load %arg4[%c0_49, %c0_50] : memref<1x128xf32, #tpu.memory_space<vmem>>, vector<1x128xf32>
      %184 = vector.broadcast %183 : vector<1x128xf32> to vector<64x128xf32>
      %185 = arith.addf %182, %184 : vector<64x128xf32>
      %186 = arith.addf %179, %185 : vector<64x128xf32>
      %c0_51 = arith.constant 0 : index
      %c0_52 = arith.constant 0 : index
      %187 = vector.load %arg8[%c0_51, %c0_52] : memref<64x128xf32, #tpu.memory_space<vmem>>, vector<64x128xf32>
      tpu.vector_store %arg8[%c0_51, %c0_52], %186 {strides = array<i32>} : memref<64x128xf32, #tpu.memory_space<vmem>>, vector<64x128xf32>,
    } else {
    }
    %c0 = arith.constant 0 : index
    %c0_1 = arith.constant 0 : index
    %3 = vector.load %arg8[%c0, %c0_1] : memref<64x128xf32, #tpu.memory_space<vmem>>, vector<64x128xf32>
    %c0_2 = arith.constant 0 : index
    %c0_3 = arith.constant 0 : index
    %c0_4 = arith.constant 0 : index
    %4 = vector.load %arg5[%c0_2, %c0_3, %c0_4] : memref<1x128x768xbf16, #tpu.memory_space<vmem>>, vector<1x128x768xbf16>
    %5 = vector.shape_cast %4 : vector<1x128x768xbf16> to vector<128x768xbf16>
    %6 = vector.extract_strided_slice %5 {offsets = [0, 384], sizes = [128, 128], strides = [1, 1]} : vector<128x768xbf16> to vector<128x128xbf16>
    %7 = vector.extract_strided_slice %5 {offsets = [0, 512], sizes = [128, 128], strides = [1, 1]} : vector<128x768xbf16> to vector<128x128xbf16>
    %8 = vector.extract_strided_slice %5 {offsets = [0, 640], sizes = [128, 128], strides = [1, 1]} : vector<128x768xbf16> to vector<128x128xbf16>
    %c0_5 = arith.constant 0 : index
    %c0_6 = arith.constant 0 : index
    %c0_7 = arith.constant 0 : index
    %9 = vector.load %arg6[%c0_5, %c0_6, %c0_7] : memref<1x8x128xf32, #tpu.memory_space<vmem>>, vector<1x8x128xf32>
    %10 = vector.shape_cast %9 : vector<1x8x128xf32> to vector<8x128xf32>
    %11 = vector.extract_strided_slice %10 {offsets = [0, 0], sizes = [1, 128], strides = [1, 1]} : vector<8x128xf32> to vector<1x128xf32>
    %12 = vector.extract_strided_slice %10 {offsets = [1, 0], sizes = [1, 128], strides = [1, 1]} : vector<8x128xf32> to vector<1x128xf32>
    %13 = vector.extract_strided_slice %10 {offsets = [2, 0], sizes = [1, 128], strides = [1, 1]} : vector<8x128xf32> to vector<1x128xf32>
    %14 = vector.extract_strided_slice %10 {offsets = [3, 0], sizes = [1, 128], strides = [1, 1]} : vector<8x128xf32> to vector<1x128xf32>
    %15 = vector.extract_strided_slice %10 {offsets = [4, 0], sizes = [1, 128], strides = [1, 1]} : vector<8x128xf32> to vector<1x128xf32>
    %16 = vector.extract_strided_slice %10 {offsets = [5, 0], sizes = [1, 128], strides = [1, 1]} : vector<8x128xf32> to vector<1x128xf32>
    %17 = vector.extract_strided_slice %10 {offsets = [6, 0], sizes = [1, 128], strides = [1, 1]} : vector<8x128xf32> to vector<1x128xf32>
    %18 = vector.extract_strided_slice %10 {offsets = [7, 0], sizes = [1, 128], strides = [1, 1]} : vector<8x128xf32> to vector<1x128xf32>
    %cst = arith.constant dense<0.000000e+00> : vector<64xf32>
    %19 = vector.multi_reduction <add>, %3, %cst [1] : vector<64x128xf32> to vector<64xf32>
    %20 = vector.shape_cast %19 : vector<64xf32> to vector<64x1xf32>
    %cst_8 = arith.constant 1.280000e+02 : f32
    %21 = vector.broadcast %cst_8 : f32 to vector<64x1xf32>
    %22 = arith.divf %20, %21 : vector<64x1xf32>
    %23 = vector.broadcast %22 : vector<64x1xf32> to vector<64x128xf32>
    %24 = arith.subf %3, %23 : vector<64x128xf32>
    %25 = arith.mulf %24, %24 : vector<64x128xf32>
    %cst_9 = arith.constant dense<0.000000e+00> : vector<64xf32>
    %26 = vector.multi_reduction <add>, %25, %cst_9 [1] : vector<64x128xf32> to vector<64xf32>
    %27 = vector.shape_cast %26 : vector<64xf32> to vector<64x1xf32>
    %cst_10 = arith.constant 1.280000e+02 : f32
    %28 = vector.broadcast %cst_10 : f32 to vector<64x1xf32>
    %29 = arith.divf %27, %28 : vector<64x1xf32>
    %30 = vector.broadcast %22 : vector<64x1xf32> to vector<64x128xf32>
    %31 = arith.subf %3, %30 : vector<64x128xf32>
    %cst_11 = arith.constant 9.99999974E-6 : f32
    %32 = vector.broadcast %cst_11 : f32 to vector<64x1xf32>
    %33 = arith.addf %29, %32 : vector<64x1xf32>
    %34 = math.rsqrt %33 : vector<64x1xf32>
    %35 = vector.broadcast %34 : vector<64x1xf32> to vector<64x128xf32>
    %36 = arith.mulf %31, %35 : vector<64x128xf32>
    %37 = vector.broadcast %11 : vector<1x128xf32> to vector<64x128xf32>
    %38 = arith.mulf %36, %37 : vector<64x128xf32>
    %39 = vector.broadcast %12 : vector<1x128xf32> to vector<64x128xf32>
    %40 = arith.addf %38, %39 : vector<64x128xf32>
    %41 = arith.truncf %40 : vector<64x128xf32> to vector<64x128xbf16>
    %42 = vector.extract_strided_slice %5 {offsets = [0, 0], sizes = [128, 384], strides = [1, 1]} : vector<128x768xbf16> to vector<128x384xbf16>
    %cst_12 = arith.constant dense<0.000000e+00> : vector<64x384xf32>
    %43 = tpu.matmul %41, %42, %cst_12 {dimension_numbers = #tpu.dot_dimension_numbers<[1], [0], [0], [1], [0, 0, 1, 1], [], []>} : vector<64x128xbf16>, vector<128x384xbf16>, vector<64x384xf32> -> vector<64x384xf32>
    %44 = vector.extract_strided_slice %43 {offsets = [0, 0], sizes = [64, 128], strides = [1, 1]} : vector<64x384xf32> to vector<64x128xf32>
    %45 = vector.broadcast %13 : vector<1x128xf32> to vector<64x128xf32>
    %46 = arith.addf %44, %45 : vector<64x128xf32>
    %47 = vector.extract_strided_slice %43 {offsets = [0, 128], sizes = [64, 128], strides = [1, 1]} : vector<64x384xf32> to vector<64x128xf32>
    %48 = vector.broadcast %14 : vector<1x128xf32> to vector<64x128xf32>
    %49 = arith.addf %47, %48 : vector<64x128xf32>
    %50 = vector.extract_strided_slice %43 {offsets = [0, 256], sizes = [64, 128], strides = [1, 1]} : vector<64x384xf32> to vector<64x128xf32>
    %51 = vector.broadcast %15 : vector<1x128xf32> to vector<64x128xf32>
    %52 = arith.addf %50, %51 : vector<64x128xf32>
    %53 = vector.broadcast %16 : vector<1x128xf32> to vector<64x128xf32>
    %54 = arith.addf %3, %53 : vector<64x128xf32>
    %55 = vector.extract_strided_slice %46 {offsets = [0, 0], sizes = [64, 32], strides = [1, 1]} : vector<64x128xf32> to vector<64x32xf32>
    %56 = arith.truncf %55 : vector<64x32xf32> to vector<64x32xbf16>
    %57 = vector.extract_strided_slice %49 {offsets = [0, 0], sizes = [64, 32], strides = [1, 1]} : vector<64x128xf32> to vector<64x32xf32>
    %58 = arith.truncf %57 : vector<64x32xf32> to vector<64x32xbf16>
    %cst_13 = arith.constant dense<0.000000e+00> : vector<64x64xf32>
    %59 = tpu.matmul %56, %58, %cst_13 {dimension_numbers = #tpu.dot_dimension_numbers<[1], [1], [0], [0], [0, 0, 1, 0], [], []>} : vector<64x32xbf16>, vector<64x32xbf16>, vector<64x64xf32> -> vector<64x64xf32>
    %cst_14 = arith.constant dense<0xFF800000> : vector<64xf32>
    %60 = vector.multi_reduction <maximumf>, %59, %cst_14 [1] : vector<64x64xf32> to vector<64xf32>
    %61 = vector.shape_cast %60 : vector<64xf32> to vector<64x1xf32>
    %62 = vector.broadcast %61 : vector<64x1xf32> to vector<64x64xf32>
    %63 = arith.subf %59, %62 : vector<64x64xf32>
    %64 = math.exp %63 : vector<64x64xf32>
    %cst_15 = arith.constant dense<0.000000e+00> : vector<64xf32>
    %65 = vector.multi_reduction <add>, %64, %cst_15 [1] : vector<64x64xf32> to vector<64xf32>
    %66 = vector.shape_cast %65 : vector<64xf32> to vector<64x1xf32>
    %67 = tpu.reciprocal %66 {approx = true} : vector<64x1xf32> -> vector<64x1xf32>
    %68 = vector.broadcast %67 : vector<64x1xf32> to vector<64x64xf32>
    %69 = arith.mulf %64, %68 : vector<64x64xf32>
    %70 = vector.extract_strided_slice %52 {offsets = [0, 0], sizes = [64, 32], strides = [1, 1]} : vector<64x128xf32> to vector<64x32xf32>
    %71 = arith.truncf %69 : vector<64x64xf32> to vector<64x64xbf16>
    %72 = arith.truncf %70 : vector<64x32xf32> to vector<64x32xbf16>
    %cst_16 = arith.constant dense<0.000000e+00> : vector<64x32xf32>
    %73 = tpu.matmul %71, %72, %cst_16 {dimension_numbers = #tpu.dot_dimension_numbers<[1], [0], [0], [1], [0, 0, 1, 1], [], []>} : vector<64x64xbf16>, vector<64x32xbf16>, vector<64x32xf32> -> vector<64x32xf32>
    %74 = vector.extract_strided_slice %6 {offsets = [0, 0], sizes = [32, 128], strides = [1, 1]} : vector<128x128xbf16> to vector<32x128xbf16>
    %75 = arith.truncf %73 : vector<64x32xf32> to vector<64x32xbf16>
    %cst_17 = arith.constant dense<0.000000e+00> : vector<64x128xf32>
    %76 = tpu.matmul %75, %74, %cst_17 {dimension_numbers = #tpu.dot_dimension_numbers<[1], [0], [0], [1], [0, 0, 1, 1], [], []>} : vector<64x32xbf16>, vector<32x128xbf16>, vector<64x128xf32> -> vector<64x128xf32>
    %77 = arith.addf %54, %76 : vector<64x128xf32>
    %78 = vector.extract_strided_slice %46 {offsets = [0, 32], sizes = [64, 32], strides = [1, 1]} : vector<64x128xf32> to vector<64x32xf32>
    %79 = arith.truncf %78 : vector<64x32xf32> to vector<64x32xbf16>
    %80 = vector.extract_strided_slice %49 {offsets = [0, 32], sizes = [64, 32], strides = [1, 1]} : vector<64x128xf32> to vector<64x32xf32>
    %81 = arith.truncf %80 : vector<64x32xf32> to vector<64x32xbf16>
    %cst_18 = arith.constant dense<0.000000e+00> : vector<64x64xf32>
    %82 = tpu.matmul %79, %81, %cst_18 {dimension_numbers = #tpu.dot_dimension_numbers<[1], [1], [0], [0], [0, 0, 1, 0], [], []>} : vector<64x32xbf16>, vector<64x32xbf16>, vector<64x64xf32> -> vector<64x64xf32>
    %cst_19 = arith.constant dense<0xFF800000> : vector<64xf32>
    %83 = vector.multi_reduction <maximumf>, %82, %cst_19 [1] : vector<64x64xf32> to vector<64xf32>
    %84 = vector.shape_cast %83 : vector<64xf32> to vector<64x1xf32>
    %85 = vector.broadcast %84 : vector<64x1xf32> to vector<64x64xf32>
    %86 = arith.subf %82, %85 : vector<64x64xf32>
    %87 = math.exp %86 : vector<64x64xf32>
    %cst_20 = arith.constant dense<0.000000e+00> : vector<64xf32>
    %88 = vector.multi_reduction <add>, %87, %cst_20 [1] : vector<64x64xf32> to vector<64xf32>
    %89 = vector.shape_cast %88 : vector<64xf32> to vector<64x1xf32>
    %90 = tpu.reciprocal %89 {approx = true} : vector<64x1xf32> -> vector<64x1xf32>
    %91 = vector.broadcast %90 : vector<64x1xf32> to vector<64x64xf32>
    %92 = arith.mulf %87, %91 : vector<64x64xf32>
    %93 = vector.extract_strided_slice %52 {offsets = [0, 32], sizes = [64, 32], strides = [1, 1]} : vector<64x128xf32> to vector<64x32xf32>
    %94 = arith.truncf %92 : vector<64x64xf32> to vector<64x64xbf16>
    %95 = arith.truncf %93 : vector<64x32xf32> to vector<64x32xbf16>
    %cst_21 = arith.constant dense<0.000000e+00> : vector<64x32xf32>
    %96 = tpu.matmul %94, %95, %cst_21 {dimension_numbers = #tpu.dot_dimension_numbers<[1], [0], [0], [1], [0, 0, 1, 1], [], []>} : vector<64x64xbf16>, vector<64x32xbf16>, vector<64x32xf32> -> vector<64x32xf32>
    %97 = vector.extract_strided_slice %6 {offsets = [32, 0], sizes = [32, 128], strides = [1, 1]} : vector<128x128xbf16> to vector<32x128xbf16>
    %98 = arith.truncf %96 : vector<64x32xf32> to vector<64x32xbf16>
    %cst_22 = arith.constant dense<0.000000e+00> : vector<64x128xf32>
    %99 = tpu.matmul %98, %97, %cst_22 {dimension_numbers = #tpu.dot_dimension_numbers<[1], [0], [0], [1], [0, 0, 1, 1], [], []>} : vector<64x32xbf16>, vector<32x128xbf16>, vector<64x128xf32> -> vector<64x128xf32>
    %100 = arith.addf %77, %99 : vector<64x128xf32>
    %101 = vector.extract_strided_slice %46 {offsets = [0, 64], sizes = [64, 32], strides = [1, 1]} : vector<64x128xf32> to vector<64x32xf32>
    %102 = arith.truncf %101 : vector<64x32xf32> to vector<64x32xbf16>
    %103 = vector.extract_strided_slice %49 {offsets = [0, 64], sizes = [64, 32], strides = [1, 1]} : vector<64x128xf32> to vector<64x32xf32>
    %104 = arith.truncf %103 : vector<64x32xf32> to vector<64x32xbf16>
    %cst_23 = arith.constant dense<0.000000e+00> : vector<64x64xf32>
    %105 = tpu.matmul %102, %104, %cst_23 {dimension_numbers = #tpu.dot_dimension_numbers<[1], [1], [0], [0], [0, 0, 1, 0], [], []>} : vector<64x32xbf16>, vector<64x32xbf16>, vector<64x64xf32> -> vector<64x64xf32>
    %cst_24 = arith.constant dense<0xFF800000> : vector<64xf32>
    %106 = vector.multi_reduction <maximumf>, %105, %cst_24 [1] : vector<64x64xf32> to vector<64xf32>
    %107 = vector.shape_cast %106 : vector<64xf32> to vector<64x1xf32>
    %108 = vector.broadcast %107 : vector<64x1xf32> to vector<64x64xf32>
    %109 = arith.subf %105, %108 : vector<64x64xf32>
    %110 = math.exp %109 : vector<64x64xf32>
    %cst_25 = arith.constant dense<0.000000e+00> : vector<64xf32>
    %111 = vector.multi_reduction <add>, %110, %cst_25 [1] : vector<64x64xf32> to vector<64xf32>
    %112 = vector.shape_cast %111 : vector<64xf32> to vector<64x1xf32>
    %113 = tpu.reciprocal %112 {approx = true} : vector<64x1xf32> -> vector<64x1xf32>
    %114 = vector.broadcast %113 : vector<64x1xf32> to vector<64x64xf32>
    %115 = arith.mulf %110, %114 : vector<64x64xf32>
    %116 = vector.extract_strided_slice %52 {offsets = [0, 64], sizes = [64, 32], strides = [1, 1]} : vector<64x128xf32> to vector<64x32xf32>
    %117 = arith.truncf %115 : vector<64x64xf32> to vector<64x64xbf16>
    %118 = arith.truncf %116 : vector<64x32xf32> to vector<64x32xbf16>
    %cst_26 = arith.constant dense<0.000000e+00> : vector<64x32xf32>
    %119 = tpu.matmul %117, %118, %cst_26 {dimension_numbers = #tpu.dot_dimension_numbers<[1], [0], [0], [1], [0, 0, 1, 1], [], []>} : vector<64x64xbf16>, vector<64x32xbf16>, vector<64x32xf32> -> vector<64x32xf32>
    %120 = vector.extract_strided_slice %6 {offsets = [64, 0], sizes = [32, 128], strides = [1, 1]} : vector<128x128xbf16> to vector<32x128xbf16>
    %121 = arith.truncf %119 : vector<64x32xf32> to vector<64x32xbf16>
    %cst_27 = arith.constant dense<0.000000e+00> : vector<64x128xf32>
    %122 = tpu.matmul %121, %120, %cst_27 {dimension_numbers = #tpu.dot_dimension_numbers<[1], [0], [0], [1], [0, 0, 1, 1], [], []>} : vector<64x32xbf16>, vector<32x128xbf16>, vector<64x128xf32> -> vector<64x128xf32>
    %123 = arith.addf %100, %122 : vector<64x128xf32>
    %124 = vector.extract_strided_slice %46 {offsets = [0, 96], sizes = [64, 32], strides = [1, 1]} : vector<64x128xf32> to vector<64x32xf32>
    %125 = arith.truncf %124 : vector<64x32xf32> to vector<64x32xbf16>
    %126 = vector.extract_strided_slice %49 {offsets = [0, 96], sizes = [64, 32], strides = [1, 1]} : vector<64x128xf32> to vector<64x32xf32>
    %127 = arith.truncf %126 : vector<64x32xf32> to vector<64x32xbf16>
    %cst_28 = arith.constant dense<0.000000e+00> : vector<64x64xf32>
    %128 = tpu.matmul %125, %127, %cst_28 {dimension_numbers = #tpu.dot_dimension_numbers<[1], [1], [0], [0], [0, 0, 1, 0], [], []>} : vector<64x32xbf16>, vector<64x32xbf16>, vector<64x64xf32> -> vector<64x64xf32>
    %cst_29 = arith.constant dense<0xFF800000> : vector<64xf32>
    %129 = vector.multi_reduction <maximumf>, %128, %cst_29 [1] : vector<64x64xf32> to vector<64xf32>
    %130 = vector.shape_cast %129 : vector<64xf32> to vector<64x1xf32>
    %131 = vector.broadcast %130 : vector<64x1xf32> to vector<64x64xf32>
    %132 = arith.subf %128, %131 : vector<64x64xf32>
    %133 = math.exp %132 : vector<64x64xf32>
    %cst_30 = arith.constant dense<0.000000e+00> : vector<64xf32>
    %134 = vector.multi_reduction <add>, %133, %cst_30 [1] : vector<64x64xf32> to vector<64xf32>
    %135 = vector.shape_cast %134 : vector<64xf32> to vector<64x1xf32>
    %136 = tpu.reciprocal %135 {approx = true} : vector<64x1xf32> -> vector<64x1xf32>
    %137 = vector.broadcast %136 : vector<64x1xf32> to vector<64x64xf32>
    %138 = arith.mulf %133, %137 : vector<64x64xf32>
    %139 = vector.extract_strided_slice %52 {offsets = [0, 96], sizes = [64, 32], strides = [1, 1]} : vector<64x128xf32> to vector<64x32xf32>
    %140 = arith.truncf %138 : vector<64x64xf32> to vector<64x64xbf16>
    %141 = arith.truncf %139 : vector<64x32xf32> to vector<64x32xbf16>
    %cst_31 = arith.constant dense<0.000000e+00> : vector<64x32xf32>
    %142 = tpu.matmul %140, %141, %cst_31 {dimension_numbers = #tpu.dot_dimension_numbers<[1], [0], [0], [1], [0, 0, 1, 1], [], []>} : vector<64x64xbf16>, vector<64x32xbf16>, vector<64x32xf32> -> vector<64x32xf32>
    %143 = vector.extract_strided_slice %6 {offsets = [96, 0], sizes = [32, 128], strides = [1, 1]} : vector<128x128xbf16> to vector<32x128xbf16>
    %144 = arith.truncf %142 : vector<64x32xf32> to vector<64x32xbf16>
    %cst_32 = arith.constant dense<0.000000e+00> : vector<64x128xf32>
    %145 = tpu.matmul %144, %143, %cst_32 {dimension_numbers = #tpu.dot_dimension_numbers<[1], [0], [0], [1], [0, 0, 1, 1], [], []>} : vector<64x32xbf16>, vector<32x128xbf16>, vector<64x128xf32> -> vector<64x128xf32>
    %146 = arith.addf %123, %145 : vector<64x128xf32>
    %cst_33 = arith.constant dense<0.000000e+00> : vector<64xf32>
    %147 = vector.multi_reduction <add>, %146, %cst_33 [1] : vector<64x128xf32> to vector<64xf32>
    %148 = vector.shape_cast %147 : vector<64xf32> to vector<64x1xf32>
    %cst_34 = arith.constant 1.280000e+02 : f32
    %149 = vector.broadcast %cst_34 : f32 to vector<64x1xf32>
    %150 = arith.divf %148, %149 : vector<64x1xf32>
    %151 = vector.broadcast %150 : vector<64x1xf32> to vector<64x128xf32>
    %152 = arith.subf %146, %151 : vector<64x128xf32>
    %153 = arith.mulf %152, %152 : vector<64x128xf32>
    %cst_35 = arith.constant dense<0.000000e+00> : vector<64xf32>
    %154 = vector.multi_reduction <add>, %153, %cst_35 [1] : vector<64x128xf32> to vector<64xf32>
    %155 = vector.shape_cast %154 : vector<64xf32> to vector<64x1xf32>
    %cst_36 = arith.constant 1.280000e+02 : f32
    %156 = vector.broadcast %cst_36 : f32 to vector<64x1xf32>
    %157 = arith.divf %155, %156 : vector<64x1xf32>
    %158 = vector.broadcast %150 : vector<64x1xf32> to vector<64x128xf32>
    %159 = arith.subf %146, %158 : vector<64x128xf32>
    %cst_37 = arith.constant 9.99999974E-6 : f32
    %160 = vector.broadcast %cst_37 : f32 to vector<64x1xf32>
    %161 = arith.addf %157, %160 : vector<64x1xf32>
    %162 = math.rsqrt %161 : vector<64x1xf32>
    %163 = vector.broadcast %162 : vector<64x1xf32> to vector<64x128xf32>
    %164 = arith.mulf %159, %163 : vector<64x128xf32>
    %165 = vector.broadcast %17 : vector<1x128xf32> to vector<64x128xf32>
    %166 = arith.mulf %164, %165 : vector<64x128xf32>
    %167 = vector.broadcast %18 : vector<1x128xf32> to vector<64x128xf32>
    %168 = arith.addf %166, %167 : vector<64x128xf32>
    %169 = arith.truncf %168 : vector<64x128xf32> to vector<64x128xbf16>
    %cst_38 = arith.constant dense<0.000000e+00> : vector<64x128xf32>
    %170 = tpu.matmul %169, %7, %cst_38 {dimension_numbers = #tpu.dot_dimension_numbers<[1], [0], [0], [1], [0, 0, 1, 1], [], []>} : vector<64x128xbf16>, vector<128x128xbf16>, vector<64x128xf32> -> vector<64x128xf32>
    %171 = arith.truncf %170 : vector<64x128xf32> to vector<64x128xbf16>
    %cst_39 = arith.constant dense<0.000000e+00> : vector<64x128xf32>
    %172 = tpu.matmul %171, %8, %cst_39 {dimension_numbers = #tpu.dot_dimension_numbers<[1], [0], [0], [1], [0, 0, 1, 1], [], []>} : vector<64x128xbf16>, vector<128x128xbf16>, vector<64x128xf32> -> vector<64x128xf32>
    %173 = arith.addf %172, %168 : vector<64x128xf32>
    %c0_40 = arith.constant 0 : index
    %c0_41 = arith.constant 0 : index
    %174 = vector.load %arg8[%c0_40, %c0_41] : memref<64x128xf32, #tpu.memory_space<vmem>>, vector<64x128xf32>
    tpu.vector_store %arg8[%c0_40, %c0_41], %173 {strides = array<i32>} : memref<64x128xf32, #tpu.memory_space<vmem>>, vector<64x128xf32>,
    %c1_i32 = arith.constant 1 : i32
    %175 = arith.cmpi eq, %arg1, %c1_i32 : i32
    %176 = arith.extui %175 : i1 to i32
    %c0_i32_42 = arith.constant 0 : i32
    %177 = arith.cmpi ne, %176, %c0_i32_42 : i32
    scf.if %177 {
      %c0_43 = arith.constant 0 : index
      %c0_44 = arith.constant 0 : index
      %c0_45 = arith.constant 0 : index
      %178 = vector.load %arg7[%c0_43, %c0_44, %c0_45] : memref<1x64x128xf32, #tpu.memory_space<vmem>>, vector<1x64x128xf32>
      %179 = vector.shape_cast %178 : vector<1x64x128xf32> to vector<64x128xf32>
      %180 = vector.shape_cast %173 : vector<64x128xf32> to vector<1x64x128xf32>
      tpu.vector_store %arg7[%c0_43, %c0_44, %c0_45], %180 {strides = array<i32>} : memref<1x64x128xf32, #tpu.memory_space<vmem>>, vector<1x64x128xf32>,
    } else {
    }
    return
  }
  func.func @transform_0(%arg0: i32, %arg1: i32) -> (i32, i32, i32) {
    %c0_i32 = arith.constant 0 : i32
    %c0_i32_0 = arith.constant 0 : i32
    %c0_i32_1 = arith.constant 0 : i32
    return %arg0, %c0_i32, %c0_i32_0 : i32, i32, i32
  }
  func.func @transform_1(%arg0: i32, %arg1: i32) -> (i32, i32) {
    %c0_i32 = arith.constant 0 : i32
    %c0_i32_0 = arith.constant 0 : i32
    %c0_i32_1 = arith.constant 0 : i32
    return %c0_i32, %c0_i32_0 : i32, i32
  }
  func.func @transform_2(%arg0: i32, %arg1: i32) -> (i32, i32) {
    %c0_i32 = arith.constant 0 : i32
    %c0_i32_0 = arith.constant 0 : i32
    %c0_i32_1 = arith.constant 0 : i32
    return %c0_i32, %c0_i32_0 : i32, i32
  }
  func.func @transform_3(%arg0: i32, %arg1: i32) -> (i32, i32, i32) {
    %c0_i32 = arith.constant 0 : i32
    %c0_i32_0 = arith.constant 0 : i32
    %c0_i32_1 = arith.constant 0 : i32
    return %arg1, %c0_i32, %c0_i32_0 : i32, i32, i32
  }
  func.func @transform_4(%arg0: i32, %arg1: i32) -> (i32, i32, i32) {
    %c0_i32 = arith.constant 0 : i32
    %c0_i32_0 = arith.constant 0 : i32
    %c0_i32_1 = arith.constant 0 : i32
    return %arg1, %c0_i32, %c0_i32_0 : i32, i32, i32
  }
  func.func @transform_5(%arg0: i32, %arg1: i32) -> (i32, i32, i32) {
    %c0_i32 = arith.constant 0 : i32
    %c0_i32_0 = arith.constant 0 : i32
    %c0_i32_1 = arith.constant 0 : i32
    return %arg0, %c0_i32, %c0_i32_0 : i32, i32, i32
  }
}

</mosaic_0001>

<bundles_post_ra>
// kernel: tpu_custom_call.1
= control target key start
LH: loop header
LB: loop body
LE: loop exit
PB: predicated region body
PF: predicated region fallthrough
CT: control target
= control target key end

     0   :  { %s5311_s0 = inlined_call_operand.hbm [shape: f32[2,64,128], index: 0, kind: input, shape index: {}]   ;;  %s5312_s1 = inlined_call_operand.hbm [shape: bf16[128,128], index: 1, kind: input, shape index: {}]   ;;  %s5313_s2 = inlined_call_operand.vmem [shape: f32[1,128], index: 2, kind: input, shape index: {}]   ;;  %s5314_s3 = inlined_call_operand.hbm [shape: bf16[2,128,768], index: 3, kind: input, shape index: {}]   ;;  %s5315_s4 = inlined_call_operand.hbm [shape: f32[2,8,128], index: 4, kind: input, shape index: {}]   ;;  %s5316_s5 = inlined_call_operand.hbm [shape: f32[2,64,128], index: 5, kind: output, shape index: {}]  }
   0x1   :  { %5326 = sst [smem:[#allocation21_spill]] %s5311_s0 }
   0x2   :  { %5327 = sst [smem:[#allocation22_spill]] %s5314_s3 }
   0x3   :  { %5328 = sst [smem:[#allocation23_spill]] %s5315_s4 }
   0x4   :  { %10 = vsyncpa [#allocation4], 0 }
   0x5   :  { %12 = vsyncpa [#allocation4 + $0x1], 0 }
   0x6   :  { %13 = vsyncpa [#allocation7], 0 }
   0x7   :  { %14 = vsyncpa [#allocation5], 0 }
   0x8   :  { %16 = vsyncpa [#allocation5 + $0x1], 0  ;;  %s4270_s18 = smov 0   ;;  %s4272_s19 = smov 0  }
   0x9   :  { %s4274_s20 = smov 0   ;;  %s4276_s21 = smov 0  }
   0xa   :  { %s4278_s22 = smov 0   ;;  %s4280_s23 = smov 0  }
   0xb   :  { %s4282_s24 = smov 0   ;;  %s4284_s25 = smov 0  }
   0xc   :  { %s4286_s26 = smov 0   ;;  %s4288_s27 = smov 0  }
   0xd   :  { %s4290_s28 = smov 0  }
   0xe LB: > { %5329 = sst [smem:[#allocation15_spill]] %s4201_s23  ;;  %s34_s29 = sadd.s32 1, %s4217_s27  ;;  %s4221_s28 = sphi %s4290_s28, %s22_s28   ;;  %s4217_s27 = sphi %s4288_s27, %s5359_s27   ;;  %s4213_s26 = sphi %s4286_s26, %s5366_s26   ;;  %s4209_s25 = sphi %s4284_s25, %s5357_s25   ;;  %s4205_s24 = sphi %s4282_s24, %s5365_s24   ;;  %s4201_s23 = sphi %s4280_s23, %s5356_s23   ;;  %s4197_s22 = sphi %s4278_s22, %s5364_s22   ;;  %s4193_s21 = sphi %s4276_s21, %s5363_s21   ;;  %s4189_s20 = sphi %s4274_s20, %s5362_s20   ;;  %s4185_s19 = sphi %s4272_s19, %s5361_s19   ;;  %s4181_s18 = sphi %s4270_s18, %s5360_s18  }
   0xf   : > { %5330 = sst [smem:[#allocation16_spill]] %s4217_s27  ;;  %p48_p0 = scmp.ne.s32.totalorder %s4201_s23, %s4197_s22 }
  0x10   : > { %p49_p1 = scmp.eq.s32.totalorder %s4221_s28, 0  ;;  %p3630_p2 = scmp.lt.s32.totalorder %s4221_s28, 4 }
  0x11   : > { %s214_s6 = sand.u32 1, %s4221_s28   ;;  %s216_s7 = sand.u32 1, %s4201_s23  }
  0x12   : > { %p50_p3 = por %p49_p1, %p48_p0  ;;  %s3031_s8 = sshll.u32 %s216_s7, 6 }
  0x13   : > { %s3154_s9 = sshll.u32 %s4217_s27, 10  ;;  %s5331_s0 = sld [smem:[#allocation21_spill]] }
  0x14   : > { %s218_s13 = scalar_lea.vmem [#allocation3], %s3031_s8  ;;  %p4344_p4 = pnand %p3630_p2, %p50_p3 }
  0x15   : > { %s225_s14 = sshll.u32 %s218_s13, 4  ;;  %s4348_s16 = scalar_lea.sflag [#allocation4], %s214_s6  ;;  %s226_s14 = int_to_ptr.vmem [resolvable:$true] %s225_s14 }
  0x16   : > { %p3985_p5 = pneg %p4344_p4  ;;  %s3996_s17 = scalar_lea.vmem %s226_s14, 1024 }
  0x17   : > { %p3997_p6 = scmp.ne.s32.totalorder %s226_s14, %s3996_s17  ;;  %s4223_s7 = smov [#allocation3]  }
  0x18   : > { %s4001_s10 = sshll.u32 %s4223_s7, 4  ;;  %s4002_s10 = int_to_ptr.vmem [resolvable:$false] %s4001_s10 }
  0x19   : > { %s224_s12 = scalar_lea.hbm %s5331_s0, %s3154_s9  ;;  %p3999_p7 = pnand %p3997_p6, %p3985_p5 }
  0x1a   : > { %s4003_s8 = scalar_lea.vmem %s4002_s10, 2048  ;;  %p4004_p9 = scmp.lt.s32.totalorder %s226_s14, %s4002_s10 }
  0x1b   : > { %p4000_p8 = pneg %p3999_p7  ;;  %p4005_p10 = scmp.lt.s32.totalorder %s4003_s8, %s3996_s17 }
  0x1d   : > { %p4006_p11 = por %p4005_p10, %p4004_p9 }
  0x1f   : > { %p4007_p12 = pnand %p4006_p11, %p4000_p8 }
  0x21   : > { %4010 = shalt.err (!%p4007_p12)
}
  0x22   : > { %s4224_s9 = smov 128   ;;  %s4225_s6 = smov 8  }
  0x23   : > { %3618 = dma.hbm_to_vmem [thread:$0]  (!%p4344_p4), %s224_s12, 1024, %s226_s14, %s4348_s16, %s4224_s9, %s4224_s9, %s4225_s6  }
  0x24   : > { %s31_s11 = sadd.s32 1, %s4213_s26  ;;  %s109_s13 = sadd.s32 1, %s4189_s20 }
  0x25   : > { %p32_p13 = scmp.ge.s32.totalorder %s31_s11, 2  ;;  %p116_p3 = scmp.ne.s32.totalorder %s4189_s20, %s4185_s19 }
  0x26   : > { %s5317_s17 = sand.u32 1, %s4189_s20   ;;  %s3597_s7 = smul.u32 6144, %s4213_s26 }
  0x27   : > { %s5368_s11 = smov (%p32_p13, %s31_s11), 0  ;;  %s5370_s29 = smov (!%p32_p13, %s34_s29), %s4217_s27 }
  0x28   : > { %5333 = sst [smem:[#allocation17_spill]] %s5368_s11  ;;  %s106_s10 = ssub.s32 %s4213_s26, %s5368_s11 }
  0x29   : > { %p118_p5 = por %p116_p3, %p49_p1  ;;  %p36_p4 = scmp.ge.s32.totalorder %s5370_s29, 2 }
  0x2a   : > { %p107_p6 = scmp.eq.s32.totalorder %s106_s10, 0  ;;  %s3596_s12 = smul.u32 384, %s5317_s17 }
  0x2b   : > { %s5334_s3 = sld [smem:[#allocation22_spill]]  ;;  %s5372_s29 = smov (%p36_p4, %s5370_s29), 0 }
  0x2c   : > { %5335 = sst [smem:[#allocation18_spill]] %s5372_s29  ;;  %s38_s6 = ssub.s32 %s4217_s27, %s5372_s29 }
  0x2d   : > { %s4380_s9 = scalar_select %p107_p6, %s4189_s20, %s109_s13  }
  0x2e   : > { %p39_p7 = scmp.eq.s32.totalorder %s38_s6, 0  ;;  %s239_s30 = scalar_lea.vmem [#allocation8], %s3596_s12 }
  0x2f   : > { %5336 = sst [smem:[#allocation19_spill]] %s4380_s9  ;;  %s246_s0 = sshll.u32 %s239_s30, 4  ;;  %s247_s0 = int_to_ptr.vmem [resolvable:$true] %s246_s0 }
  0x30   : > { %p4386_p1 = pnand %p3630_p2, %p118_p5  ;;  %s5338_s17 = sadd.s32 1, %s4201_s23 }
  0x31   : > { %s4375_s8 = scalar_lea.hbm %s5334_s3, %s3597_s7  ;;  %s4024_s14 = scalar_lea.vmem %s247_s0, 6144 }
  0x32   : > { %s4393_s7 = scalar_select %p39_p7, %s4201_s23, %s5338_s17  }
  0x33   : > { %p5318_p8 = pneg %p4386_p1  ;;  %p4025_p9 = scmp.ne.s32.totalorder %s247_s0, %s4024_s14 }
  0x34   : > { %5339 = sst [smem:[#allocation20_spill]] %s4393_s7  ;;  %s4226_s30 = smov [#allocation8]  }
  0x35   : > { %p4027_p10 = pnand %p4025_p9, %p5318_p8  ;;  %s4029_s13 = sshll.u32 %s4226_s30, 4  ;;  %s4030_s13 = int_to_ptr.vmem [resolvable:$false] %s4029_s13 }
  0x36   : > { %s4031_s12 = scalar_lea.vmem %s4030_s13, 12288  ;;  %p4032_p2 = scmp.lt.s32.totalorder %s247_s0, %s4030_s13 }
  0x37   : > { %p4028_p11 = pneg %p4027_p10  ;;  %p4033_p12 = scmp.lt.s32.totalorder %s4031_s12, %s4024_s14 }
  0x39   : > { %p4034_p13 = por %p4033_p12, %p4032_p2 }
  0x3b   : > { %p4035_p3 = pnand %p4034_p13, %p4028_p11 }
  0x3d   : > { %4038 = shalt.err (!%p4035_p3)
}
  0x3e   : > { %s4227_s15 = smov 384   ;;  %s4228_s17 = smov 24  }
  0x3f   : > { %3621 = dma.hbm_to_vmem [thread:$0]  (!%p4386_p1), %s4375_s8, 6144, %s247_s0, %s4348_s16, %s4227_s15, %s4227_s15, %s4228_s17  }
  0x40   : > { %s4405_s6 = sadd.s32 4294967295, %s4221_s28   ;;  %s3027_s14 = sadd.s32 4294967294, %s4221_s28  }
  0x41   : > { %p54_p5 = scmp.ne.s32.totalorder %s4197_s22, %s4193_s21  ;;  %p5323_p4 = scmp.eq.s32.totalorder %s4405_s6, 0 }
  0x42   : > { %p122_p6 = scmp.ne.s32.totalorder %s4185_s19, %s4181_s18  ;;  %p172_p7 = scmp.eq.s32.totalorder %s4405_s6, 3 }
  0x43   : > { %p178_p9 = scmp.eq.s32.totalorder %s3027_s14, 3  ;;  %p4416_p10 = por %p5323_p4, %p54_p5 }
  0x44   : > { %p4422_p11 = por %p122_p6, %p5323_p4  ;;  %p4429_p2 = por %p172_p7, %p48_p0 }
  0x45   : > { %p4433_p12 = por %p178_p9, %p54_p5  ;;  %p3028_p13 = scmp.ge.s32.totalorder %s4221_s28, 1 }
  0x46   : > { %s5341_s0 = scalar_select %p4422_p11, 1, 0 }
  0x47   : > { %s5342_s8 = scalar_select %p4429_p2, 1, 0 }
  0x48   : > { %s5343_s18 = scalar_select %p4433_p12, 1, 0 }
  0x49   : > { %p185_p3 = scmp.lt.s32.totalorder %s4221_s28, 5  ;;  %s4229_s12 = smov [#allocation6]  }
  0x4a   : > { %s197_s15 = sshll.u32 %s4229_s12, 4  ;;  %s5345_s17 = sand.u32 1, %s4189_s20   ;;  %s198_s15 = int_to_ptr.vmem [resolvable:$true] %s197_s15 }
  0x4b   : > { %p4439_p8 = pnand %p3028_p13, %p185_p3  ;;  %s3035_s14 = sshll.u32 %s5345_s17, 3 }
  0x4c   : > { %s3036_s3 = sshll.u32 %s4213_s26, 7  ;;  %s5347_s4 = sld [smem:[#allocation23_spill]] }
  0x4d   : > { %p3611_p6 = pneg %p4439_p8  ;;  %s260_s23 = scalar_lea.vmem [#allocation9], %s3035_s14 }
  0x4e   : > { %s267_s9 = sshll.u32 %s260_s23, 4  ;;  %s4050_s12 = scalar_lea.vmem %s198_s15, 1024  ;;  %s268_s9 = int_to_ptr.vmem [resolvable:$true] %s267_s9 }
  0x4f   : > { %p4450_p0 = pnand %p3611_p6, %p5323_p4  ;;  %p4051_p7 = scmp.ne.s32.totalorder %s198_s15, %s4050_s12 }
  0x50   : > { %p4058_p3 = scmp.lt.s32.totalorder %s198_s15, %s198_s15  ;;  %p4059_p6 = scmp.lt.s32.totalorder %s4050_s12, %s4050_s12 }
  0x51   : > { %p4041_p5 = pneg %p4450_p0 }
  0x52   : > { %s4457_s7 = scalar_lea.hbm %s5347_s4, %s3036_s3  ;;  %p4060_p4 = por %p4059_p6, %p4058_p3 }
  0x53   : > { %p4053_p9 = pnand %p4051_p7, %p4041_p5 }
  0x55   : > { %p4054_p13 = pneg %p4053_p9 }
  0x57   : > { %p4061_p12 = pnand %p4060_p4, %p4054_p13 }
  0x59   : > { %4064 = shalt.err (!%p4061_p12)
}
  0x5a   : > { %s4230_s17 = smov 64   ;;  %s4231_s27 = smov 4  }
  0x5b   : > { %3614 = dma.hbm_to_vmem [thread:$0]  (!%p4450_p0), %s5312_s1, 1024, %s198_s15, [#allocation7], %s4230_s17, %s4230_s17, %s4231_s27  }
  0x5c   : > { %s4078_s23 = scalar_lea.vmem %s268_s9, 128  ;;  %p5348_p11 = pneg %p4386_p1 }
  0x5d   : > { %p4079_p2 = scmp.ne.s32.totalorder %s268_s9, %s4078_s23  ;;  %s4232_s14 = smov [#allocation9]  }
  0x5e   : > { %s4083_s12 = sshll.u32 %s4232_s14, 4  ;;  %s4084_s12 = int_to_ptr.vmem [resolvable:$false] %s4083_s12 }
  0x5f   : > { %p4081_p5 = pnand %p4079_p2, %p5348_p11  ;;  %s4085_s4 = scalar_lea.vmem %s4084_s12, 256 }
  0x60   : > { %p4086_p4 = scmp.lt.s32.totalorder %s268_s9, %s4084_s12  ;;  %p4087_p12 = scmp.lt.s32.totalorder %s4085_s4, %s4078_s23 }
  0x61   : > { %p4082_p7 = pneg %p4081_p5 }
  0x62   : > { %p4088_p9 = por %p4087_p12, %p4086_p4 }
  0x64   : > { %p4089_p13 = pnand %p4088_p9, %p4082_p7 }
  0x66   : > { %4092 = shalt.err (!%p4089_p13)
}
  0x67   : > { %3624 = dma.hbm_to_vmem [thread:$0]  (!%p4386_p1), %s4457_s7, 128, %s268_s9, %s4348_s16  }
  0x68   : > { %276 = sbr.rel (%p4439_p8) target bundleno = 3499 (0xdab), region = 40  ;;  %s278_s29 = sand.u32 (!%p4439_p8), 1, %s4405_s6  }
  0x69   : > { %s280_s15 = sand.u32 (!%p4439_p8), 1, %s4197_s22   ;;  %s279_s4 = scalar_lea.sflag (!%p4439_p8), [#allocation4], %s278_s29 }
  0x6a   : > { %s3038_s17 = sshll.u32 (!%p4439_p8), %s280_s15, 6 }
  0x6b   : > { %s4479_s27 = scalar_lea.vmem (!%p4439_p8), [#allocation3], %s3038_s17 }
  0x6d   : > { %4164 = dma.done.wait (%p4416_p10), %s279_s4, 1024  }
  0x6e   : > { %4166 = vsyncadd (%p4416_p10), %s279_s4, 4294966272  ;;  %p5349_p1 = scmp.eq.s32.totalorder %s4405_s6, 0 }
  0x70   : > { %4168 = dma.done.wait (%p5349_p1), [#allocation7], 1024   ;;  %p5350_p8 = pmov %p5349_p1 }
  0x71   : > { %s293_s16 = sand.u32 1, %s4185_s19   ;;  %p5351_p11 = scmp.ne.s32.totalorder %s5341_s0, 0 }
  0x72   : > { %4170 = vsyncadd (%p5350_p8), [#allocation7], 4294966272  ;;  %s3598_s9 = smul.u32 384, %s293_s16 }
  0x74   : > { %s4490_s10 = scalar_lea.vmem [#allocation8], %s3598_s9 }
  0x75   : > { %4172 = dma.done.wait (%p5351_p11), %s279_s4, 6272  }
  0x76   : > { %4174 = vsyncadd (%p5351_p11), %s279_s4, 4294961024  ;;  %s4496_s7 = sshll.u32 %s293_s16, 3  ;;  %s4499_s13 = scalar_lea.vmem [#allocation10], %s3038_s17 }
  0x77   : > { %s304_s30 = scalar_lea.vmem [#allocation9], %s4496_s7  ;;  %p3042_p10 = scmp.ne.s32.totalorder %s4205_s24, 0 }
  0x79   : > { %345 = sbr.rel (%p3042_p10) target bundleno = 363 (0x16b), region = 60 }
  0x7e   : > { %v3734_v0 = vld [vmem:[#allocation6 + $0x38] sm:$0xff]   ;;  %v3735_v1 = vld [vmem:[#allocation6 + $0x30] sm:$0xff]   ;;  %v3736_v2 = vld [vmem:[#allocation6 + $0x28] sm:$0xff]  }
  0x7f   : > { %3292 = vmatprep.subr.bf16.mxu0 %v3734_v0  ;;  %3564 = vmatprep.subr.bf16.mxu1 %v3734_v0  ;;  %v3737_v3 = vld [vmem:[#allocation6 + $0x20] sm:$0xff]   ;;  %v4504_v5 = vld [vmem:[%s4479_s27 + $0x8] sm:$0xff]  ;;  %v3738_v10 = vld [vmem:[#allocation6 + $0x18] sm:$0xff]  }
  0x80   : > { %3293 = vmatpush3.bf16.msra.mxu0 %v3734_v0  ;;  %3572 = vmatpush3.bf16.msra.mxu1 %v3734_v0  ;;  %v346_v4 = vld [vmem:[%s4479_s27] sm:$0xff]  ;;  %v4509_v8 = vld [vmem:[%s4479_s27 + $0x28] sm:$0xff]  ;;  %v3739_v11 = vld [vmem:[#allocation6 + $0x10] sm:$0xff]  }
  0x81   : > { %3294 = vmatprep.subr.bf16.mxu0 %v3735_v1  ;;  %3565 = vmatprep.subr.bf16.mxu1 %v3735_v1  ;;  %v350_v6 = vld [vmem:[%s4479_s27 + $0x20] sm:$0xff]  ;;  %v354_v7 = vpack.c.bf16 %v4504_v5, %v346_v4  ;;  %v3740_v12 = vld [vmem:[#allocation6 + $0x8] sm:$0xff]   ;;  %v348_v14 = vld [vmem:[%s4479_s27 + $0x10] sm:$0xff] }
  0x82   : > { %v356_v9 = vpack.c.bf16 %v4509_v8, %v350_v6  ;;  %v3741_v13 = vld [vmem:[#allocation6] sm:$0xff]   ;;  %v349_v15 = vld [vmem:[%s4479_s27 + $0x18] sm:$0xff]  ;;  %v352_v16 = vld [vmem:[%s4479_s27 + $0x30] sm:$0xff] }
  0x83   : > { %3308 = vmatprep.mubr.bf16.mxu0 %v354_v7  ;;  %v353_v17 = vld [vmem:[%s4479_s27 + $0x38] sm:$0xff]  ;;  %v355_v18 = vpack.c.bf16 %v349_v15, %v348_v14  ;;  %v3043_v20 = vld [vmem:[%s5313_s2] ss:$0 sm:$0xff] }
  0x84   : > { %3295 = vmatpush3.bf16.msra.mxu0 %v3735_v1  ;;  %3573 = vmatpush3.bf16.msra.mxu1 %v3735_v1  ;;  %v357_v19 = vpack.c.bf16 %v353_v17, %v352_v16 }
  0x85   : > { %3296 = vmatprep.subr.bf16.mxu0 %v3736_v2  ;;  %3566 = vmatprep.subr.bf16.mxu1 %v3736_v2 }
  0x86   : > { %3312 = vmatprep.mubr.bf16.mxu1 %v356_v9 }
  0x88   : > { %3297 = vmatpush3.bf16.msra.mxu0 %v3736_v2  ;;  %3574 = vmatpush3.bf16.msra.mxu1 %v3736_v2 }
  0x89   : > { %3298 = vmatprep.subr.bf16.mxu0 %v3737_v3  ;;  %3567 = vmatprep.subr.bf16.mxu1 %v3737_v3 }
  0x8c   : > { %3299 = vmatpush3.bf16.msra.mxu0 %v3737_v3  ;;  %3575 = vmatpush3.bf16.msra.mxu1 %v3737_v3 }
  0x8d   : > { %3300 = vmatprep.subr.bf16.mxu0 %v3738_v10  ;;  %3568 = vmatprep.subr.bf16.mxu1 %v3738_v10 }
  0x90   : > { %3301 = vmatpush3.bf16.msra.mxu0 %v3738_v10  ;;  %3576 = vmatpush3.bf16.msra.mxu1 %v3738_v10 }
  0x91   : > { %3302 = vmatprep.subr.bf16.mxu0 %v3739_v11  ;;  %3569 = vmatprep.subr.bf16.mxu1 %v3739_v11 }
  0x94   : > { %3303 = vmatpush3.bf16.msra.mxu0 %v3739_v11  ;;  %3577 = vmatpush3.bf16.msra.mxu1 %v3739_v11 }
  0x95   : > { %3304 = vmatprep.subr.bf16.mxu0 %v3740_v12  ;;  %3570 = vmatprep.subr.bf16.mxu1 %v3740_v12 }
  0x98   : > { %3305 = vmatpush3.bf16.msra.mxu0 %v3740_v12  ;;  %3578 = vmatpush3.bf16.msra.mxu1 %v3740_v12 }
  0x99   : > { %3306 = vmatprep.subr.bf16.mxu0 %v3741_v13  ;;  %3571 = vmatprep.subr.bf16.mxu1 %v3741_v13 }
  0x9c   : > { %3307 = vmatpush3.bf16.msra.mxu0 %v3741_v13  ;;  %3579 = vmatpush3.bf16.msra.mxu1 %v3741_v13 }
  0x9f   : > { %3309 = vmatmul.mubr.bf16.vlgmr.msra.gmra.mxu0 %v355_v18  ;;  %3313 = vmatmul.mubr.bf16.vlgmr.msra.gmra.mxu1 %v357_v19 }
 0x15f   : > { %v3310_v21 = vpop.f32.mrf.mxu0  ;;  %v3314_v22 = vpop.f32.mrf.mxu1 }
 0x160   : > { %v472_v23 = vadd.f32 %v3310_v21, %v3043_v20  ;;  %v488_v24 = vadd.f32 %v3314_v22, %v3043_v20 }
 0x161   : > { %v463_v25 = vpop.f32.mrf.mxu0  ;;  %v479_v26 = vpop.f32.mrf.mxu1 }
 0x162   : > { %v496_v27 = vadd.f32 %v472_v23, %v348_v14  ;;  %v500_v28 = vadd.f32 %v488_v24, %v352_v16  ;;  %v464_v29 = vadd.f32 %v3043_v20, %v463_v25  ;;  %v480_v30 = vadd.f32 %v3043_v20, %v479_v26 }
 0x163   : > { %v3311_v31 = vpop.f32.mrf.mxu0  ;;  %v3315_v32 = vpop.f32.mrf.mxu1 }
 0x164   : > { %504 = vst [vmem:[#allocation2 + $0x18] sm:$0xff] %v496_v27  ;;  %508 = vst [vmem:[#allocation2 + $0x28] sm:$0xff] %v500_v28  ;;  %v494_v33 = vadd.f32 %v464_v29, %v346_v4  ;;  %v498_v34 = vadd.f32 %v480_v30, %v350_v6  ;;  %v475_v35 = vadd.f32 %v3311_v31, %v3043_v20 }
 0x165   : > { %v491_v36 = vadd.f32 %v3315_v32, %v3043_v20  ;;  %v466_v37 = vpop.f32.mrf.mxu0  ;;  %v482_v38 = vpop.f32.mrf.mxu1 }
 0x166   : > { %502 = vst [vmem:[#allocation2 + $0x30] sm:$0xff] %v494_v33  ;;  %506 = vst [vmem:[#allocation2 + $0x8] sm:$0xff] %v498_v34  ;;  %v497_v39 = vadd.f32 %v475_v35, %v349_v15  ;;  %v467_v41 = vadd.f32 %v3043_v20, %v466_v37  ;;  %v483_v42 = vadd.f32 %v3043_v20, %v482_v38 }
 0x167   : > { %v501_v40 = vadd.f32 %v491_v36, %v353_v17 }
 0x168   : > { %505 = vst [vmem:[#allocation2 + $0x10] sm:$0xff] %v497_v39  ;;  %v495_v43 = vadd.f32 %v467_v41, %v4504_v5  ;;  %v499_v44 = vadd.f32 %v483_v42, %v4509_v8 }
 0x169   : > { %509 = vst [vmem:[#allocation2 + $0x38] sm:$0xff] %v501_v40 }
 0x16a   : > { %503 = vst [vmem:[#allocation2] sm:$0xff] %v495_v43  ;;  %507 = vst [vmem:[#allocation2 + $0x20] sm:$0xff] %v499_v44 }
 0x16b PF: > { %v512_v46 = vld [vmem:[#allocation2 + $0x18] sm:$0xff]  ;;  %v516_v51 = vld [vmem:[#allocation2 + $0x28] sm:$0xff]  ;;  %v4233_v43 = vmov 0   ;;  %vm1006_vm0 = vcmask 261120   ;;  %s4234_s3 = smov 96   ;;  %vm1096_vm1 = vcmask 523264  }
 0x16c   : > { %571 = vadd.xlane.f32.xlu1 %v512_v46  ;;  %v3742_v53 = vld [vmem:[%s4490_s10 + $0x154] ss:$24 sps:$4 sm:$0xff]   ;;  %v3744_v54 = vld [vmem:[%s4490_s10 + $0x150] ss:$24 sps:$4 sm:$0xff]   ;;  %v3745_v22 = vld [vmem:[%s4490_s10 + $0x124] ss:$24 sps:$4 sm:$0xff]   ;;  %844 = vmatprep.mubr.bf16.mxu0 %v4233_v43 }
 0x16d   : > { %v510_v45 = vld [vmem:[#allocation2 + $0x30] sm:$0xff]  ;;  %v514_v49 = vld [vmem:[#allocation2 + $0x8] sm:$0xff]  ;;  %812 = vmatprep.subr.bf16.mxu0 %v3742_v53  ;;  %v3750_v24 = vld [vmem:[%s4490_s10 + $0x120] ss:$24 sps:$4 sm:$0xff]   ;;  %s4235_s11 = smov 64   ;;  %s4236_s23 = smov 32  }
 0x16e   : > { %567 = vadd.xlane.f32.xlu0 %v510_v45  ;;  %813 = vmatpush1.bf16.msra.mxu0 %v3744_v54  ;;  %v3747_v23 = vld [vmem:[%s4490_s10 + $0x158] ss:$24 sps:$4 sm:$0xff]   ;;  %v3751_v26 = vld [vmem:[%s4490_s10 + $0xf4] ss:$24 sps:$4 sm:$0xff]   ;;  %v3753_v27 = vld [vmem:[%s4490_s10 + $0x128] ss:$24 sps:$4 sm:$0xff]  }
 0x16f   : > { %v513_v48 = vld [vmem:[#allocation2 + $0x10] sm:$0xff]  ;;  %814 = vmatprep.subr.bf16.mxu0 %v3745_v22  ;;  %3316 = vmatprep.subr.bf16.mxu1 %v3747_v23  ;;  %v3756_v29 = vld [vmem:[%s4490_s10 + $0xc4] ss:$24 sps:$4 sm:$0xff]   ;;  %v3760_v31 = vld [vmem:[%s4490_s10 + $0xc0] ss:$24 sps:$4 sm:$0xff]   ;;  %p3148_p2 = scmp.ne.s32.totalorder %s4205_s24, 1 }
 0x170   : > { %573 = vadd.xlane.f32.xlu1 %v513_v48  ;;  %v517_v52 = vld [vmem:[#allocation2 + $0x38] sm:$0xff]  ;;  %3317 = vmatpush3.bf16.msra.mxu1 %v3747_v23  ;;  %v3755_v28 = vld [vmem:[%s4490_s10 + $0xf0] ss:$24 sps:$4 sm:$0xff]   ;;  %v3761_v32 = vld [vmem:[%s4490_s10 + $0x94] ss:$24 sps:$4 sm:$0xff]  }
 0x171   : > { %v511_v47 = vld [vmem:[#allocation2] sm:$0xff]  ;;  %3318 = vmatprep.subr.bf16.mxu1 %v3753_v27  ;;  %v3758_v30 = vld [vmem:[%s4490_s10 + $0xf8] ss:$24 sps:$4 sm:$0xff]   ;;  %v3771_v38 = vld [vmem:[%s4490_s10 + $0x34] ss:$24 sps:$4 sm:$0xff]  }
 0x172   : > { %v515_v50 = vld [vmem:[#allocation2 + $0x20] sm:$0xff]  ;;  %569 = vadd.xlane.f32.xlu0 %v511_v47  ;;  %815 = vmatpush1.bf16.msra.mxu0 %v3750_v24  ;;  %v3765_v34 = vld [vmem:[%s4490_s10 + $0x90] ss:$24 sps:$4 sm:$0xff]  }
 0x173   : > { %816 = vmatprep.subr.bf16.mxu0 %v3751_v26  ;;  %v3763_v33 = vld [vmem:[%s4490_s10 + $0xc8] ss:$24 sps:$4 sm:$0xff]   ;;  %v3766_v35 = vld [vmem:[%s4490_s10 + $0x64] ss:$24 sps:$4 sm:$0xff]   ;;  %v3768_v36 = vld [vmem:[%s4490_s10 + $0x98] ss:$24 sps:$4 sm:$0xff]  }
 0x174   : > { %577 = vadd.xlane.f32.xlu1 %v515_v50  ;;  %3319 = vmatpush3.bf16.msra.mxu1 %v3753_v27  ;;  %v3770_v37 = vld [vmem:[%s4490_s10 + $0x60] ss:$24 sps:$4 sm:$0xff]   ;;  %v3775_v40 = vld [vmem:[%s4490_s10 + $0x30] ss:$24 sps:$4 sm:$0xff]   ;;  %v3776_v41 = vld [vmem:[%s4490_s10 + $0x4] ss:$24 sps:$4 sm:$0xff]  }
 0x175   : > { %3320 = vmatprep.subr.bf16.mxu1 %v3758_v30  ;;  %v3773_v39 = vld [vmem:[%s4490_s10 + $0x68] ss:$24 sps:$4 sm:$0xff]   ;;  %v3778_v42 = vld [vmem:[%s4490_s10 + $0x38] ss:$24 sps:$4 sm:$0xff]  }
 0x176   : > { %575 = vadd.xlane.f32.xlu0 %v514_v49  ;;  %817 = vmatpush1.bf16.msra.mxu0 %v3755_v28  ;;  %v3780_v44 = vld [vmem:[%s4490_s10] ss:$24 sps:$4 sm:$0xff]  }
 0x177   : > { %818 = vmatprep.subr.bf16.mxu0 %v3756_v29 }
 0x178   : > { %581 = vadd.xlane.f32.xlu1 %v517_v52  ;;  %3321 = vmatpush3.bf16.msra.mxu1 %v3758_v30 }
 0x179   : > { %3322 = vmatprep.subr.bf16.mxu1 %v3763_v33 }
 0x17a   : > { %579 = vadd.xlane.f32.xlu0 %v516_v51  ;;  %819 = vmatpush1.bf16.msra.mxu0 %v3760_v31 }
 0x17b   : > { %820 = vmatprep.subr.bf16.mxu0 %v3761_v32 }
 0x17c   : > { %3323 = vmatpush3.bf16.msra.mxu1 %v3763_v33 }
 0x17d   : > { %3324 = vmatprep.subr.bf16.mxu1 %v3768_v36 }
 0x17e   : > { %821 = vmatpush1.bf16.msra.mxu0 %v3765_v34 }
 0x17f   : > { %822 = vmatprep.subr.bf16.mxu0 %v3766_v35 }
 0x180   : > { %3325 = vmatpush3.bf16.msra.mxu1 %v3768_v36 }
 0x181   : > { %3326 = vmatprep.subr.bf16.mxu1 %v3773_v39 }
 0x182   : > { %823 = vmatpush1.bf16.msra.mxu0 %v3770_v37 }
 0x183   : > { %824 = vmatprep.subr.bf16.mxu0 %v3771_v38 }
 0x184   : > { %3327 = vmatpush3.bf16.msra.mxu1 %v3773_v39 }
 0x185   : > { %3328 = vmatprep.subr.bf16.mxu1 %v3778_v42 }
 0x186   : > { %825 = vmatpush1.bf16.msra.mxu0 %v3775_v40 }
 0x187   : > { %826 = vmatprep.subr.bf16.mxu0 %v3776_v41 }
 0x188   : > { %3329 = vmatpush3.bf16.msra.mxu1 %v3778_v42 }
 0x18a   : > { %827 = vmatpush1.bf16.msra.mxu0 %v3780_v44 }
 0x1f5   : > { %v572_v56 = vpop.xlane.xlu1 %571 }
 0x1f6   : > { %v586_v58 = vmul.f32 0.0078125, %v572_v56 }
 0x1f7   : > { %v568_v55 = vpop.xlane.xlu0 %567 }
 0x1f8   : > { %v584_v57 = vmul.f32 0.0078125, %v568_v55  ;;  %v4525_v60 = vsub.f32 %v512_v46, %v586_v58  ;;  %v656_v55 = vlaneseq }
 0x1f9   : > { %v574_v62 = vpop.xlane.xlu1 %573 }
 0x1fa   : > { %v4523_v59 = vsub.f32 %v510_v45, %v584_v57  ;;  %v587_v1 = vmul.f32 0.0078125, %v574_v62  ;;  %v602_v2 = vmul.f32 %v4525_v60, %v4525_v60  ;;  %v3781_v45 = vld [vmem:[%s4490_s10 + $0x8] ss:$24 sps:$4 sm:$0xff]  }
 0x1fb   : > { %v570_v61 = vpop.xlane.xlu0 %569  ;;  %3330 = vmatprep.subr.bf16.mxu1 %v3781_v45 }
 0x1fc   : > { %v585_v63 = vmul.f32 0.0078125, %v570_v61  ;;  %v600_v0 = vmul.f32 %v4523_v59, %v4523_v59  ;;  %v4533_v4 = vsub.f32 %v513_v48, %v587_v1  ;;  %3331 = vmatpush3.bf16.msra.mxu1 %v3781_v45 }
 0x1fd   : > { %v578_v6 = vpop.xlane.xlu1 %577 }
 0x1fe   : > { %608 = vadd.xlane.f32.xlu0 %v600_v0  ;;  %v4531_v3 = vsub.f32 %v511_v47, %v585_v63  ;;  %v589_v9 = vmul.f32 0.0078125, %v578_v6  ;;  %v603_v10 = vmul.f32 %v4533_v4, %v4533_v4  ;;  %v4578_v0 = vshrl.u32 %v656_v55, 7 }
 0x1ff   : > { %v576_v5 = vpop.xlane.xlu0 %575 }
 0x200   : > { %v588_v7 = vmul.f32 0.0078125, %v576_v5  ;;  %v601_v8 = vmul.f32 %v4531_v3, %v4531_v3  ;;  %v4541_v12 = vsub.f32 %v515_v50, %v589_v9  ;;  %v658_v9 = vsub.s32 0, %v4578_v0 }
 0x201   : > { %v582_v14 = vpop.xlane.xlu1 %581 }
 0x202   : > { %612 = vadd.xlane.f32.xlu0 %v602_v2  ;;  %610 = vadd.xlane.f32.xlu1 %v601_v8  ;;  %v4539_v11 = vsub.f32 %v514_v49, %v588_v7  ;;  %v591_v17 = vmul.f32 0.0078125, %v582_v14  ;;  %v605_v18 = vmul.f32 %v4541_v12, %v4541_v12 }
 0x203   : > { %v580_v13 = vpop.xlane.xlu0 %579 }
 0x204   : > { %v590_v15 = vmul.f32 0.0078125, %v580_v13  ;;  %v604_v16 = vmul.f32 %v4539_v11, %v4539_v11  ;;  %v4549_v20 = vsub.f32 %v517_v52, %v591_v17  ;;  %v4583_v13 = vld [vmem:[%s304_s30] sm:$0xff] }
 0x206   : > { %614 = vadd.xlane.f32.xlu1 %v603_v10  ;;  %616 = vadd.xlane.f32.xlu0 %v604_v16  ;;  %v4547_v19 = vsub.f32 %v516_v51, %v590_v15  ;;  %v607_v25 = vmul.f32 %v4549_v20, %v4549_v20 }
 0x208   : > { %v606_v21 = vmul.f32 %v4547_v19, %v4547_v19 }
 0x20a   : > { %618 = vadd.xlane.f32.xlu1 %v605_v18  ;;  %620 = vadd.xlane.f32.xlu0 %v606_v21  ;;  %v659_v18 = vrot.slane %v4583_v13, %v658_v9  ;;  %v670_v21 = vsub.s32 1, %v4578_v0 }
 0x20c   : > { %v671_v26 = vrot.slane %v4583_v13, %v670_v21 }
 0x20e   : > { %622 = vadd.xlane.f32.xlu1 %v607_v25 }
 0x287   : > { %v609_v46 = vpop.xlane.xlu0 %608 }
 0x288   : > { %v624_v47 = vmul.f32 0.0078125, %v609_v46 }
 0x28a   : > { %v632_v48 = vadd.f32 1e-05, %v624_v47 }
 0x28b   : > { %v611_v49 = vpop.xlane.xlu1 %610  ;;  %v613_v50 = vpop.xlane.xlu0 %612 }
 0x28c   : > { %3814 = vrsqrt.f32 %v632_v48  ;;  %v625_v51 = vmul.f32 0.0078125, %v611_v49  ;;  %v626_v52 = vmul.f32 0.0078125, %v613_v50 }
 0x28e   : > { %v633_v53 = vadd.f32 1e-05, %v625_v51  ;;  %v634_v54 = vadd.f32 1e-05, %v626_v52 }
 0x28f   : > { %v615_v56 = vpop.xlane.xlu1 %614  ;;  %v617_v57 = vpop.xlane.xlu0 %616 }
 0x290   : > { %3816 = vrsqrt.f32 %v633_v53  ;;  %v627_v58 = vmul.f32 0.0078125, %v615_v56  ;;  %v628_v61 = vmul.f32 0.0078125, %v617_v57 }
 0x291   : > { %3818 = vrsqrt.f32 %v634_v54 }
 0x292   : > { %v635_v62 = vadd.f32 1e-05, %v627_v58  ;;  %v636_v63 = vadd.f32 1e-05, %v628_v61 }
 0x293   : > { %v619_v1 = vpop.xlane.xlu1 %618  ;;  %v621_v2 = vpop.xlane.xlu0 %620 }
 0x294   : > { %3820 = vrsqrt.f32 %v635_v62  ;;  %v629_v5 = vmul.f32 0.0078125, %v619_v1  ;;  %v630_v6 = vmul.f32 0.0078125, %v621_v2 }
 0x295   : > { %3822 = vrsqrt.f32 %v636_v63 }
 0x296   : > { %v637_v7 = vadd.f32 1e-05, %v629_v5  ;;  %v638_v8 = vadd.f32 1e-05, %v630_v6  ;;  %v976_v5 = vsub.s32 4, %v4578_v0 }
 0x297   : > { %v623_v10 = vpop.xlane.xlu1 %622 }
 0x298   : > { %3824 = vrsqrt.f32 %v637_v7  ;;  %v631_v14 = vmul.f32 0.0078125, %v623_v10  ;;  %v977_v10 = vrot.slane %v4583_v13, %v976_v5 }
 0x299   : > { %v3815_v15 = vpop.eup %3814  ;;  %3826 = vrsqrt.f32 %v638_v8 }
 0x29a   : > { %v639_v16 = vadd.f32 1e-05, %v631_v14  ;;  %v648_v17 = vmul.f32 %v3815_v15, %v4523_v59 }
 0x29c   : > { %3828 = vrsqrt.f32 %v639_v16  ;;  %v660_v25 = vmul.f32 %v659_v18, %v648_v17  ;;  %v964_v16 = vsub.s32 3, %v4578_v0 }
 0x29d   : > { %v3817_v22 = vpop.eup %3816 }
 0x29e   : > { %v3819_v23 = vpop.eup %3818  ;;  %v649_v24 = vmul.f32 %v3817_v22, %v4531_v3  ;;  %v672_v32 = vadd.f32 %v671_v26, %v660_v25 }
 0x29f   : > { %v650_v27 = vmul.f32 %v3819_v23, %v4525_v60 }
 0x2a0   : > { %v661_v28 = vmul.f32 %v659_v18, %v649_v24 }
 0x2a1   : > { %v3821_v29 = vpop.eup %3820  ;;  %v662_v30 = vmul.f32 %v659_v18, %v650_v27  ;;  %v965_v27 = vrot.slane %v4583_v13, %v964_v16 }
 0x2a2   : > { %v3823_v31 = vpop.eup %3822  ;;  %v673_v59 = vadd.f32 %v671_v26, %v661_v28  ;;  %v651_v33 = vmul.f32 %v3821_v29, %v4533_v4 }
 0x2a3   : > { %v652_v34 = vmul.f32 %v3823_v31, %v4539_v11  ;;  %v674_v38 = vadd.f32 %v671_v26, %v662_v30 }
 0x2a4   : > { %v680_v35 = vpack.c.bf16 %v673_v59, %v672_v32  ;;  %v663_v36 = vmul.f32 %v659_v18, %v651_v33 }
 0x2a5   : > { %v3825_v37 = vpop.eup %3824  ;;  %v664_v40 = vmul.f32 %v659_v18, %v652_v34 }
 0x2a6   : > { %v3827_v3 = vpop.eup %3826  ;;  %845 = vmatmul.mubr.bf16.vlgmr.msra.gmra.mxu0 %v680_v35  ;;  %3332 = vmatprep.mubr.bf16.mxu1 %v680_v35  ;;  %v675_v39 = vadd.f32 %v671_v26, %v663_v36  ;;  %v653_v60 = vmul.f32 %v3825_v37, %v4541_v12 }
 0x2a7   : > { %854 = vmatprep.mubr.bf16.mxu0 %v4233_v43  ;;  %v654_v41 = vmul.f32 %v3827_v3, %v4547_v19  ;;  %v676_v11 = vadd.f32 %v671_v26, %v664_v40  ;;  %v952_v19 = vsub.s32 2, %v4578_v0 }
 0x2a8   : > { %v681_v42 = vpack.c.bf16 %v675_v39, %v674_v38  ;;  %v665_v44 = vmul.f32 %v659_v18, %v653_v60 }
 0x2a9   : > { %v3829_v4 = vpop.eup %3828  ;;  %v666_v47 = vmul.f32 %v659_v18, %v654_v41 }
 0x2aa   : > { %3333 = vmatmul.mubr.bf16.vlgmr.msra.gmra.mxu1 %v681_v42  ;;  %v677_v45 = vadd.f32 %v671_v26, %v665_v44  ;;  %v655_v46 = vmul.f32 %v3829_v4, %v4549_v20  ;;  %v4601_v20 = vrot.slane %v4583_v13, %v952_v19 }
 0x2ab   : > { %v678_v50 = vadd.f32 %v671_v26, %v666_v47 }
 0x2ac   : > { %v682_v48 = vpack.c.bf16 %v677_v45, %v676_v11  ;;  %v667_v49 = vmul.f32 %v659_v18, %v655_v46 }
 0x2ae   : > { %855 = vmatmul.mubr.bf16.gmra.mxu0 %v681_v42  ;;  %3336 = vmatprep.mubr.bf16.mxu1 %v682_v48  ;;  %v679_v12 = vadd.f32 %v671_v26, %v667_v49 }
 0x2af   : > { %864 = vmatprep.mubr.bf16.mxu0 %v4233_v43 }
 0x2b0   : > { %v683_v51 = vpack.c.bf16 %v679_v12, %v678_v50 }
 0x2b2   : > { %3337 = vmatmul.mubr.bf16.gmra.mxu1 %v683_v51 }
 0x2b6   : > { %865 = vmatmul.mubr.bf16.gmra.mxu0 %v682_v48 }
 0x2b7   : > { %874 = vmatprep.mubr.bf16.mxu0 %v4233_v43 }
 0x2be   : > { %875 = vmatmul.mubr.bf16.gmra.mxu0 %v683_v51 }
 0x366   : > { %v846_v52 = vpop.f32.mrf.mxu0 }
 0x367   : > { %v954_v56 = vadd.f32 %v4601_v20, %v846_v52 }
 0x368   : > { %v848_v53 = vpop.f32.mrf.mxu0 }
 0x369   : > { %v966_v44 = vadd.f32 %v965_v27, %v848_v53 }
 0x36a   : > { %v850_v54 = vpop.f32.mrf.mxu0  ;;  %v3334_v55 = vpop.f32.mrf.mxu1 }
 0x36b   : > { %v955_v57 = vadd.f32 %v4601_v20, %v850_v54  ;;  %v980_v31 = vadd.f32 %v3334_v55, %v977_v10 }
 0x36c   : > { %v852_v58 = vpop.f32.mrf.mxu0  ;;  %v919_v61 = vpop.f32.mrf.mxu1 }
 0x36d   : > { %v4605_v62 = vpack.c.bf16 %v955_v57, %v954_v56  ;;  %v978_v38 = vadd.f32 %v977_v10, %v919_v61  ;;  %v967_v60 = vadd.f32 %v965_v27, %v852_v58 }
 0x36e   : > { %v856_v43 = vpop.f32.mrf.mxu0  ;;  %v3335_v63 = vpop.f32.mrf.mxu1 }
 0x36f   : > { %3348 = vmatprep.mubr.msk.bf16.mxu0 %vm1006_vm0, %v4605_v62  ;;  %v981_v28 = vadd.f32 %v3335_v63, %v977_v10  ;;  %v4636_v45 = vpack.c.bf16 %v967_v60, %v966_v44  ;;  %v956_v48 = vadd.f32 %v4601_v20, %v856_v43 }
 0x370   : > { %v858_v1 = vpop.f32.mrf.mxu0  ;;  %v922_v2 = vpop.f32.mrf.mxu1 }
 0x371   : > { %v4620_v34 = vpack.c.bf16 %v981_v28, %v980_v31  ;;  %v979_v35 = vadd.f32 %v977_v10, %v922_v2  ;;  %v968_v3 = vadd.f32 %v965_v27, %v858_v1  ;;  %v1020_v56 = vsel %vm1006_vm0, %v4636_v45, 0 }
 0x372   : > { %v860_v6 = vpop.f32.mrf.mxu0  ;;  %v3338_v7 = vpop.f32.mrf.mxu1 }
 0x373   : > { %v984_v17 = vadd.f32 %v3338_v7, %v977_v10  ;;  %v4628_v40 = vpack.c.bf16 %v979_v35, %v978_v38  ;;  %v957_v46 = vadd.f32 %v4601_v20, %v860_v6 }
 0x374   : > { %v862_v8 = vpop.f32.mrf.mxu0  ;;  %v935_v9 = vpop.f32.mrf.mxu1 }
 0x375   : > { %v982_v23 = vadd.f32 %v977_v10, %v935_v9  ;;  %v969_v36 = vadd.f32 %v965_v27, %v862_v8  ;;  %v4651_v50 = vpack.c.bf16 %v957_v46, %v956_v48 }
 0x376   : > { %v866_v14 = vpop.f32.mrf.mxu0  ;;  %v3339_v15 = vpop.f32.mrf.mxu1 }
 0x377   : > { %v985_v18 = vadd.f32 %v3339_v15, %v977_v10  ;;  %v4630_v41 = vpack.c.bf16 %v969_v36, %v968_v3  ;;  %v958_v19 = vadd.f32 %v4601_v20, %v866_v14 }
 0x378   : > { %v868_v21 = vpop.f32.mrf.mxu0  ;;  %v938_v22 = vpop.f32.mrf.mxu1 }
 0x379   : > { %v4612_v24 = vpack.c.bf16 %v985_v18, %v984_v17  ;;  %v983_v25 = vadd.f32 %v977_v10, %v938_v22  ;;  %v970_v32 = vadd.f32 %v965_v27, %v868_v21 }
 0x37a   : > { %v870_v26 = vpop.f32.mrf.mxu0 }
 0x37b   : > { %v4615_v29 = vpack.c.bf16 %v983_v25, %v982_v23  ;;  %3356 = vmatprep.subr.bf16.mxu1 %v4612_v24  ;;  %v959_v12 = vadd.f32 %v4601_v20, %v870_v26 }
 0x37c   : > { %v872_v30 = vpop.f32.mrf.mxu0  ;;  %3357 = vmatpush3.bf16.msra.mxu1 %v4612_v24 }
 0x37d   : > { %v971_v59 = vadd.f32 %v965_v27, %v872_v30  ;;  %3358 = vmatprep.subr.bf16.mxu1 %v4615_v29  ;;  %v4663_v53 = vpack.c.bf16 %v959_v12, %v958_v19 }
 0x37e   : > { %v876_v33 = vpop.f32.mrf.mxu0 }
 0x37f   : > { %v4622_v37 = vpack.c.bf16 %v971_v59, %v970_v32  ;;  %v960_v52 = vadd.f32 %v4601_v20, %v876_v33 }
 0x380   : > { %v878_v13 = vpop.f32.mrf.mxu0  ;;  %3359 = vmatpush3.bf16.msra.mxu1 %v4615_v29 }
 0x381   : > { %1387 = vrot.lane.b32.xlu1 %v4622_v37, %s4234_s3  ;;  %3360 = vmatprep.subr.bf16.mxu1 %v4620_v34  ;;  %v972_v4 = vadd.f32 %v965_v27, %v878_v13  ;;  %v1026_v55 = vsel %vm1006_vm0, %v4622_v37, 0 }
 0x382   : > { %v880_v39 = vpop.f32.mrf.mxu0 }
 0x383   : > { %v961_v51 = vadd.f32 %v4601_v20, %v880_v39  ;;  %v1023_v20 = vsel %vm1006_vm0, %v4630_v41, 0 }
 0x384   : > { %v882_v42 = vpop.f32.mrf.mxu0  ;;  %3361 = vmatpush3.bf16.msra.mxu1 %v4620_v34 }
 0x385   : > { %v973_v11 = vadd.f32 %v965_v27, %v882_v42  ;;  %1385 = vrot.lane.b32.xlu1 %v4630_v41, %s4234_s3  ;;  %3362 = vmatprep.subr.bf16.mxu1 %v4628_v40  ;;  %v4665_v54 = vpack.c.bf16 %v961_v51, %v960_v52 }
 0x387   : > { %v4639_v47 = vpack.c.bf16 %v973_v11, %v972_v4 }
 0x388   : > { %3363 = vmatpush3.bf16.msra.mxu1 %v4628_v40 }
 0x389   : > { %1383 = vrot.lane.b32.xlu1 %v4636_v45, %s4234_s3  ;;  %1389 = vrot.lane.b32.xlu0 %v4639_v47, %s4234_s3  ;;  %v1029_v49 = vsel %vm1006_vm0, %v4639_v47, 0 }
 0x38a   : > { %3580 = vmatprep.subr.msk.bf16.mxu0 %vm1006_vm0, %v4639_v47 }
 0x38b   : > { %3341 = vmatpush3.bf16.xpose.msra.mxu0 %v1029_v49 }
 0x38c   : > { %3581 = vmatprep.subr.msk.bf16.mxu0 %vm1006_vm0, %v4622_v37 }
 0x38d   : > { %1373 = vrot.lane.b32.xlu1 %v4651_v50, %s4234_s3  ;;  %1371 = vrot.lane.b32.xlu0 %v4605_v62, %s4234_s3 }
 0x391   : > { %1377 = vrot.lane.b32.xlu1 %v4665_v54, %s4234_s3  ;;  %1375 = vrot.lane.b32.xlu0 %v4663_v53, %s4234_s3 }
 0x393   : > { %3343 = vmatpush3.bf16.xpose.msra.mxu0 %v1026_v55 }
 0x394   : > { %3582 = vmatprep.subr.msk.bf16.mxu0 %vm1006_vm0, %v4630_v41 }
 0x39b   : > { %3345 = vmatpush3.bf16.xpose.msra.mxu0 %v1023_v20 }
 0x39c   : > { %3583 = vmatprep.subr.msk.bf16.mxu0 %vm1006_vm0, %v4636_v45 }
 0x3a3   : > { %3347 = vmatpush3.bf16.xpose.msra.mxu0 %v1020_v56 }
 0x3aa   : > { %3349 = vmatmul.mubr.msk.bf16.vlgmr.msra.gmra.mxu0 %vm1006_vm0, %v4651_v50 }
 0x3ab   : > { %3352 = vmatprep.mubr.msk.bf16.mxu0 %vm1006_vm0, %v4663_v53 }
 0x3b2   : > { %3353 = vmatmul.mubr.msk.bf16.gmra.mxu0 %vm1006_vm0, %v4665_v54 }
 0x3f3   : > { %v1388_v61 = vpop.permute.xlu1 %1387 }
 0x3f4   : > { %v1410_v63 = vsel %vm1006_vm0, %v1388_v61, 0 }
 0x3f7   : > { %v1386_v1 = vpop.permute.xlu1 %1385 }
 0x3f8   : > { %v1407_v2 = vsel %vm1006_vm0, %v1386_v1, 0 }
 0x3fb   : > { %v1390_v57 = vpop.permute.xlu0 %1389  ;;  %v1384_v5 = vpop.permute.xlu1 %1383 }
 0x3fc   : > { %3584 = vmatprep.subr.msk.bf16.mxu0 %vm1006_vm0, %v1390_v57  ;;  %v1413_v58 = vsel %vm1006_vm0, %v1390_v57, 0  ;;  %v1404_v6 = vsel %vm1006_vm0, %v1384_v5, 0 }
 0x3fd   : > { %3385 = vmatpush3.bf16.xpose.msra.mxu0 %v1413_v58 }
 0x3fe   : > { %3585 = vmatprep.subr.msk.bf16.mxu0 %vm1006_vm0, %v1388_v61 }
 0x3ff   : > { %v1372_v43 = vpop.permute.xlu0 %1371  ;;  %v1374_v7 = vpop.permute.xlu1 %1373 }
 0x400   : > { %3392 = vmatprep.mubr.msk.bf16.mxu0 %vm1006_vm0, %v1372_v43 }
 0x403   : > { %v1376_v8 = vpop.permute.xlu0 %1375  ;;  %v1378_v9 = vpop.permute.xlu1 %1377 }
 0x405   : > { %3387 = vmatpush3.bf16.xpose.msra.mxu0 %v1410_v63 }
 0x406   : > { %3586 = vmatprep.subr.msk.bf16.mxu0 %vm1006_vm0, %v1386_v1 }
 0x40d   : > { %3389 = vmatpush3.bf16.xpose.msra.mxu0 %v1407_v2 }
 0x40e   : > { %3587 = vmatprep.subr.msk.bf16.mxu0 %vm1006_vm0, %v1384_v5 }
 0x415   : > { %3391 = vmatpush3.bf16.xpose.msra.mxu0 %v1404_v6 }
 0x41c   : > { %3393 = vmatmul.mubr.msk.bf16.vlgmr.msra.gmra.mxu0 %vm1006_vm0, %v1374_v7 }
 0x41d   : > { %3396 = vmatprep.mubr.msk.bf16.mxu0 %vm1006_vm0, %v1376_v8 }
 0x424   : > { %3397 = vmatmul.mubr.msk.bf16.gmra.mxu0 %vm1006_vm0, %v1378_v9 }
 0x46a   : > { %v3350_v10 = vpop.f32.mrf.mxu0 }
 0x46b   : > { %v1103_v18 = vsel %vm1096_vm1, %v3350_v10, -inf }
 0x46c   : > { %v1065_v14 = vpop.f32.mrf.mxu0 }
 0x46d   : > { %v1097_v15 = vsel %vm1096_vm1, %v1065_v14, -inf }
 0x46e   : > { %1098 = vmax.xlane.f32.xlu0 %v1097_v15  ;;  %v3351_v16 = vpop.f32.mrf.mxu0 }
 0x46f   : > { %v1106_v25 = vsel %vm1096_vm1, %v3351_v16, -inf }
 0x470   : > { %v1068_v17 = vpop.f32.mrf.mxu0 }
 0x471   : > { %v1100_v21 = vsel %vm1096_vm1, %v1068_v17, -inf }
 0x472   : > { %1104 = vmax.xlane.f32.xlu0 %v1103_v18  ;;  %1101 = vmax.xlane.f32.xlu1 %v1100_v21  ;;  %v3354_v22 = vpop.f32.mrf.mxu0 }
 0x473   : > { %v1115_v31 = vsel %vm1096_vm1, %v3354_v22, -inf }
 0x474   : > { %v1081_v23 = vpop.f32.mrf.mxu0 }
 0x475   : > { %v1109_v28 = vsel %vm1096_vm1, %v1081_v23, -inf }
 0x476   : > { %1107 = vmax.xlane.f32.xlu0 %v1106_v25  ;;  %v3355_v26 = vpop.f32.mrf.mxu0 }
 0x477   : > { %v1118_v32 = vsel %vm1096_vm1, %v3355_v26, -inf }
 0x478   : > { %v1084_v27 = vpop.f32.mrf.mxu0 }
 0x479   : > { %v1112_v30 = vsel %vm1096_vm1, %v1084_v27, -inf }
 0x47a   : > { %1110 = vmax.xlane.f32.xlu0 %v1109_v28  ;;  %1113 = vmax.xlane.f32.xlu1 %v1112_v30 }
 0x47e   : > { %1116 = vmax.xlane.f32.xlu0 %v1115_v31  ;;  %1119 = vmax.xlane.f32.xlu1 %v1118_v32 }
 0x4dc   : > { %v4755_v18 = vpop.f32.mrf.mxu0 }
 0x4dd   : > { %v1486_v28 = vsel %vm1096_vm1, %v4755_v18, -inf }
 0x4de   : > { %v4757_v21 = vpop.f32.mrf.mxu0 }
 0x4f7   : > { %v1099_v59 = vpop.xlane.xlu0 %1098 }
 0x4f8   : > { %v1121_v33 = vsub.f32 %v1065_v14, %v1099_v59 }
 0x4fa   : > { %v1129_v35 = vmul.f32 1.442695, %v1121_v33 }
 0x4fb   : > { %v1105_v36 = vpop.xlane.xlu0 %1104  ;;  %v1102_v13 = vpop.xlane.xlu1 %1101 }
 0x4fc   : > { %3830 = vpow2.f32 %v1129_v35  ;;  %v1123_v38 = vsub.f32 %v3350_v10, %v1105_v36  ;;  %v1122_v3 = vsub.f32 %v1068_v17, %v1102_v13 }
 0x4fe   : > { %v1133_v39 = vmul.f32 1.442695, %v1123_v38  ;;  %v1131_v60 = vmul.f32 1.442695, %v1122_v3 }
 0x4ff   : > { %v1108_v42 = vpop.xlane.xlu0 %1107 }
 0x500   : > { %3832 = vpow2.f32 %v1133_v39  ;;  %v1124_v44 = vsub.f32 %v3351_v16, %v1108_v42 }
 0x501   : > { %3834 = vpow2.f32 %v1131_v60 }
 0x502   : > { %v1135_v4 = vmul.f32 1.442695, %v1124_v44 }
 0x503   : > { %v1111_v11 = vpop.xlane.xlu0 %1110  ;;  %v1114_v46 = vpop.xlane.xlu1 %1113 }
 0x504   : > { %3836 = vpow2.f32 %v1135_v4  ;;  %v1125_v48 = vsub.f32 %v1081_v23, %v1111_v11  ;;  %v1126_v49 = vsub.f32 %v1084_v27, %v1114_v46 }
 0x506   : > { %v1137_v12 = vmul.f32 1.442695, %v1125_v48  ;;  %v1139_v51 = vmul.f32 1.442695, %v1126_v49 }
 0x507   : > { %v1117_v19 = vpop.xlane.xlu0 %1116  ;;  %v1120_v52 = vpop.xlane.xlu1 %1119 }
 0x508   : > { %3838 = vpow2.f32 %v1137_v12  ;;  %v1127_v55 = vsub.f32 %v3354_v22, %v1117_v19  ;;  %v1128_v20 = vsub.f32 %v3355_v26, %v1120_v52  ;;  %v4759_v22 = vpop.f32.mrf.mxu0  ;;  %v1480_v26 = vsel %vm1096_vm1, %v4757_v21, -inf }
 0x509   : > { %v4707_v56 = vpop.eup %3830  ;;  %3840 = vpow2.f32 %v1139_v51  ;;  %v1489_v31 = vsel %vm1096_vm1, %v4759_v22, -inf }
 0x50a   : > { %v1141_v57 = vmul.f32 1.442695, %v1127_v55  ;;  %v1143_v58 = vmul.f32 1.442695, %v1128_v20  ;;  %v1145_v61 = vsel %vm1096_vm1, %v4707_v56, 0.0  ;;  %v4761_v23 = vpop.f32.mrf.mxu0 }
 0x50b   : > { %1146 = vadd.xlane.f32.xlu0 %v1145_v61  ;;  %v1483_v32 = vsel %vm1096_vm1, %v4761_v23, -inf }
 0x50c   : > { %3842 = vpow2.f32 %v1141_v57  ;;  %v4763_v25 = vpop.f32.mrf.mxu0 }
 0x50d   : > { %v4711_v43 = vpop.eup %3832  ;;  %3844 = vpow2.f32 %v1143_v58  ;;  %v1498_v36 = vsel %vm1096_vm1, %v4763_v25, -inf }
 0x50e   : > { %v4713_v63 = vpop.eup %3834  ;;  %v1151_v1 = vsel %vm1096_vm1, %v4711_v43, 0.0  ;;  %v4767_v27 = vpop.f32.mrf.mxu0 }
 0x50f   : > { %1152 = vadd.xlane.f32.xlu0 %v1151_v1  ;;  %v1148_v2 = vsel %vm1096_vm1, %v4713_v63, 0.0  ;;  %v1492_v33 = vsel %vm1096_vm1, %v4767_v27, -inf }
 0x510   : > { %1149 = vadd.xlane.f32.xlu1 %v1148_v2  ;;  %v4771_v30 = vpop.f32.mrf.mxu0 }
 0x511   : > { %v4719_v5 = vpop.eup %3836  ;;  %v1501_v13 = vsel %vm1096_vm1, %v4771_v30, -inf }
 0x512   : > { %v1154_v6 = vsel %vm1096_vm1, %v4719_v5, 0.0  ;;  %v4777_v59 = vpop.f32.mrf.mxu0 }
 0x513   : > { %v1495_v35 = vsel %vm1096_vm1, %v4777_v59, -inf }
 0x514   : > { %1155 = vadd.xlane.f32.xlu1 %v1154_v6 }
 0x515   : > { %v4723_v7 = vpop.eup %3838 }
 0x516   : > { %v4725_v8 = vpop.eup %3840  ;;  %v1157_v9 = vsel %vm1096_vm1, %v4723_v7, 0.0 }
 0x517   : > { %1158 = vadd.xlane.f32.xlu0 %v1157_v9  ;;  %v1160_v10 = vsel %vm1096_vm1, %v4725_v8, 0.0 }
 0x518   : > { %1161 = vadd.xlane.f32.xlu1 %v1160_v10 }
 0x519   : > { %v4731_v14 = vpop.eup %3842 }
 0x51a   : > { %v4733_v15 = vpop.eup %3844  ;;  %v1163_v16 = vsel %vm1096_vm1, %v4731_v14, 0.0 }
 0x51b   : > { %1164 = vadd.xlane.f32.xlu0 %v1163_v16  ;;  %v1166_v17 = vsel %vm1096_vm1, %v4733_v15, 0.0 }
 0x51c   : > { %1167 = vadd.xlane.f32.xlu1 %v1166_v17 }
 0x52d   : > { %1774 = vrot.lane.b32.xlu1 %v4622_v37, %s4235_s11 }
 0x531   : > { %1772 = vrot.lane.b32.xlu1 %v4630_v41, %s4235_s11  ;;  %1776 = vrot.lane.b32.xlu0 %v4639_v47, %s4235_s11 }
 0x535   : > { %1770 = vrot.lane.b32.xlu1 %v4636_v45, %s4235_s11  ;;  %1762 = vrot.lane.b32.xlu0 %v4605_v62, %s4235_s11 }
 0x539   : > { %1764 = vrot.lane.b32.xlu1 %v4651_v50, %s4235_s11  ;;  %1766 = vrot.lane.b32.xlu0 %v4663_v53, %s4235_s11 }
 0x53d   : > { %1768 = vrot.lane.b32.xlu1 %v4665_v54, %s4235_s11 }
 0x558   : > { %1481 = vmax.xlane.f32.xlu0 %v1480_v26 }
 0x55c   : > { %1487 = vmax.xlane.f32.xlu0 %v1486_v28 }
 0x560   : > { %1490 = vmax.xlane.f32.xlu0 %v1489_v31 }
 0x561   : > { %1484 = vmax.xlane.f32.xlu1 %v1483_v32 }
 0x564   : > { %1493 = vmax.xlane.f32.xlu0 %v1492_v33 }
 0x565   : > { %1496 = vmax.xlane.f32.xlu1 %v1495_v35 }
 0x568   : > { %1499 = vmax.xlane.f32.xlu0 %v1498_v36 }
 0x569   : > { %1502 = vmax.xlane.f32.xlu1 %v1501_v13 }
 0x594   : > { %v1147_v38 = vpop.xlane.xlu0 %1146 }
 0x595   : > { %3846 = vrcp.f32 %v1147_v38 }
 0x598   : > { %v1153_v3 = vpop.xlane.xlu0 %1152 }
 0x599   : > { %v1150_v39 = vpop.xlane.xlu1 %1149 }
 0x59a   : > { %3848 = vrcp.f32 %v1150_v39 }
 0x59b   : > { %3850 = vrcp.f32 %v1153_v3 }
 0x59d   : > { %v1156_v60 = vpop.xlane.xlu1 %1155 }
 0x59e   : > { %3852 = vrcp.f32 %v1156_v60 }
 0x5a0   : > { %v1159_v42 = vpop.xlane.xlu0 %1158 }
 0x5a1   : > { %3854 = vrcp.f32 %v1159_v42  ;;  %v1162_v44 = vpop.xlane.xlu1 %1161 }
 0x5a2   : > { %3856 = vrcp.f32 %v1162_v44  ;;  %v3847_v11 = vpop.eup %3846 }
 0x5a3   : > { %v1177_v12 = vmul.f32 %v3847_v11, %v4707_v56 }
 0x5a4   : > { %v1165_v4 = vpop.xlane.xlu0 %1164 }
 0x5a5   : > { %3858 = vrcp.f32 %v1165_v4  ;;  %v1168_v46 = vpop.xlane.xlu1 %1167 }
 0x5a6   : > { %3860 = vrcp.f32 %v1168_v46 }
 0x5a7   : > { %v3849_v48 = vpop.eup %3848 }
 0x5a8   : > { %v1777_v49 = vpop.permute.xlu0 %1776  ;;  %v1178_v51 = vmul.f32 %v3849_v48, %v4713_v63  ;;  %v3851_v19 = vpop.eup %3850 }
 0x5a9   : > { %v1800_v52 = vsel %vm1006_vm0, %v1777_v49, 0  ;;  %3588 = vmatprep.subr.msk.bf16.mxu0 %vm1006_vm0, %v1777_v49  ;;  %v1775_v55 = vpop.permute.xlu1 %1774  ;;  %v1179_v58 = vmul.f32 %v3851_v19, %v4711_v43  ;;  %v3783_v49 = vld [vmem:[%s4490_s10 + $0x3c] ss:$24 sps:$4 sm:$0xff]   ;;  %v3784_v19 = vld [vmem:[%s4490_s10 + $0xc] ss:$24 sps:$4 sm:$0xff]  }
 0x5aa   : > { %3429 = vmatpush3.bf16.xpose.msra.mxu0 %v1800_v52  ;;  %v1185_v20 = vpack.c.bf16 %v1178_v51, %v1177_v12  ;;  %v1797_v10 = vsel %vm1006_vm0, %v1775_v55, 0  ;;  %3372 = vmatprep.subr.bf16.mxu1 %v3783_v49 }
 0x5ab   : > { %v3853_v57 = vpop.eup %3852  ;;  %3589 = vmatprep.subr.msk.bf16.mxu0 %vm1006_vm0, %v1775_v55 }
 0x5ac   : > { %v1180_v61 = vmul.f32 %v3853_v57, %v4719_v5  ;;  %3364 = vmatprep.mubr.msk.bf16.mxu1 %vm1096_vm1, %v1185_v20  ;;  %v1763_v56 = vpop.permute.xlu0 %1762 }
 0x5ad   : > { %3436 = vmatprep.mubr.msk.bf16.mxu0 %vm1006_vm0, %v1763_v56  ;;  %v1773_v43 = vpop.permute.xlu1 %1772 }
 0x5ae   : > { %v3855_v63 = vpop.eup %3854  ;;  %v1186_v1 = vpack.c.bf16 %v1180_v61, %v1179_v58 }
 0x5af   : > { %v3857_v2 = vpop.eup %3856  ;;  %v1181_v6 = vmul.f32 %v3855_v63, %v4723_v7 }
 0x5b0   : > { %3365 = vmatmul.mubr.msk.bf16.vlgmr.msra.gmra.mxu1 %vm1096_vm1, %v1186_v1  ;;  %v1182_v9 = vmul.f32 %v3857_v2, %v4725_v8  ;;  %v1794_v8 = vsel %vm1006_vm0, %v1773_v43, 0  ;;  %v1767_v35 = vpop.permute.xlu0 %1766 }
 0x5b1   : > { %v1771_v31 = vpop.permute.xlu1 %1770  ;;  %3373 = vmatpush3.bf16.msra.mxu1 %v3783_v49 }
 0x5b2   : > { %v3859_v16 = vpop.eup %3858  ;;  %3431 = vmatpush3.bf16.xpose.msra.mxu0 %v1797_v10  ;;  %v1187_v5 = vpack.c.bf16 %v1182_v9, %v1181_v6  ;;  %v1791_v32 = vsel %vm1006_vm0, %v1771_v31, 0  ;;  %3374 = vmatprep.subr.bf16.mxu1 %v3784_v19 }
 0x5b3   : > { %v3861_v17 = vpop.eup %3860  ;;  %3590 = vmatprep.subr.msk.bf16.mxu0 %vm1006_vm0, %v1773_v43  ;;  %v1183_v26 = vmul.f32 %v3859_v16, %v4731_v14 }
 0x5b4   : > { %3368 = vmatprep.mubr.msk.bf16.mxu1 %vm1096_vm1, %v1187_v5  ;;  %v1184_v28 = vmul.f32 %v3861_v17, %v4733_v15 }
 0x5b5   : > { %v1765_v33 = vpop.permute.xlu1 %1764  ;;  %3375 = vmatpush3.bf16.msra.mxu1 %v3784_v19 }
 0x5b6   : > { %v1188_v7 = vpack.c.bf16 %v1184_v28, %v1183_v26 }
 0x5b8   : > { %3369 = vmatmul.mubr.msk.bf16.gmra.mxu1 %vm1096_vm1, %v1188_v7 }
 0x5b9   : > { %v1769_v14 = vpop.permute.xlu1 %1768 }
 0x5ba   : > { %3433 = vmatpush3.bf16.xpose.msra.mxu0 %v1794_v8 }
 0x5bb   : > { %3591 = vmatprep.subr.msk.bf16.mxu0 %vm1006_vm0, %v1771_v31 }
 0x5c2   : > { %3435 = vmatpush3.bf16.xpose.msra.mxu0 %v1791_v32 }
 0x5c9   : > { %3437 = vmatmul.mubr.msk.bf16.vlgmr.msra.gmra.mxu0 %vm1006_vm0, %v1765_v33 }
 0x5ca   : > { %3440 = vmatprep.mubr.msk.bf16.mxu0 %vm1006_vm0, %v1767_v35 }
 0x5d1   : > { %3441 = vmatmul.mubr.msk.bf16.gmra.mxu0 %vm1006_vm0, %v1769_v14 }
 0x5e1   : > { %v1482_v15 = vpop.xlane.xlu0 %1481 }
 0x5e2   : > { %v1504_v36 = vsub.f32 %v4757_v21, %v1482_v15 }
 0x5e4   : > { %v1512_v3 = vmul.f32 1.442695, %v1504_v36 }
 0x5e5   : > { %v1488_v13 = vpop.xlane.xlu0 %1487 }
 0x5e6   : > { %v1506_v38 = vsub.f32 %v4755_v18, %v1488_v13 }
 0x5e8   : > { %v1516_v39 = vmul.f32 1.442695, %v1506_v38 }
 0x5e9   : > { %v1491_v60 = vpop.xlane.xlu0 %1490 }
 0x5ea   : > { %3862 = vpow2.f32 %v1516_v39  ;;  %v1507_v42 = vsub.f32 %v4759_v22, %v1491_v60  ;;  %v1485_v44 = vpop.xlane.xlu1 %1484 }
 0x5eb   : > { %v1505_v4 = vsub.f32 %v4761_v23, %v1485_v44  ;;  %3864 = vpow2.f32 %v1512_v3 }
 0x5ec   : > { %v1518_v11 = vmul.f32 1.442695, %v1507_v42 }
 0x5ed   : > { %v1514_v46 = vmul.f32 1.442695, %v1505_v4  ;;  %v1494_v48 = vpop.xlane.xlu0 %1493 }
 0x5ee   : > { %3866 = vpow2.f32 %v1518_v11  ;;  %v1508_v21 = vsub.f32 %v4767_v27, %v1494_v48  ;;  %v1497_v2 = vpop.xlane.xlu1 %1496 }
 0x5ef   : > { %3868 = vpow2.f32 %v1514_v46  ;;  %v1509_v10 = vsub.f32 %v4777_v59, %v1497_v2 }
 0x5f0   : > { %v1520_v51 = vmul.f32 1.442695, %v1508_v21 }
 0x5f1   : > { %v1500_v18 = vpop.xlane.xlu0 %1499  ;;  %v1522_v43 = vmul.f32 1.442695, %v1509_v10 }
 0x5f2   : > { %v1510_v12 = vsub.f32 %v4763_v25, %v1500_v18  ;;  %v1503_v6 = vpop.xlane.xlu1 %1502 }
 0x5f3   : > { %v1511_v9 = vsub.f32 %v4771_v30, %v1503_v6 }
 0x5f4   : > { %v1524_v22 = vmul.f32 1.442695, %v1510_v12 }
 0x5f5   : > { %v1526_v16 = vmul.f32 1.442695, %v1511_v9 }
 0x5f6   : > { %3870 = vpow2.f32 %v1524_v22 }
 0x5f7   : > { %v4819_v23 = vpop.eup %3862  ;;  %3872 = vpow2.f32 %v1520_v51 }
 0x5f8   : > { %v1534_v52 = vsel %vm1096_vm1, %v4819_v23, 0.0  ;;  %v4823_v55 = vpop.eup %3864  ;;  %3874 = vpow2.f32 %v1526_v16 }
 0x5f9   : > { %1535 = vadd.xlane.f32.xlu0 %v1534_v52  ;;  %v1528_v25 = vsel %vm1096_vm1, %v4823_v55, 0.0  ;;  %3876 = vpow2.f32 %v1522_v43 }
 0x5fb   : > { %v4825_v27 = vpop.eup %3866 }
 0x5fc   : > { %v1537_v20 = vsel %vm1096_vm1, %v4825_v27, 0.0  ;;  %v4831_v57 = vpop.eup %3868 }
 0x5fd   : > { %1529 = vadd.xlane.f32.xlu0 %v1528_v25  ;;  %1538 = vadd.xlane.f32.xlu1 %v1537_v20  ;;  %v1531_v58 = vsel %vm1096_vm1, %v4831_v57, 0.0 }
 0x601   : > { %1532 = vadd.xlane.f32.xlu1 %v1531_v58 }
 0x603   : > { %v4835_v61 = vpop.eup %3870 }
 0x604   : > { %v1546_v56 = vsel %vm1096_vm1, %v4835_v61, 0.0  ;;  %v4839_v63 = vpop.eup %3872 }
 0x605   : > { %1547 = vadd.xlane.f32.xlu0 %v1546_v56  ;;  %v1540_v1 = vsel %vm1096_vm1, %v4839_v63, 0.0  ;;  %v4859_v30 = vpop.eup %3874 }
 0x606   : > { %v4863_v5 = vpop.eup %3876 }
 0x609   : > { %1541 = vadd.xlane.f32.xlu0 %v1540_v1 }
 0x612   : > { %1580 = vrot.lane.b32.xlu1 %v4615_v29, %s4234_s3 }
 0x616   : > { %1578 = vrot.lane.b32.xlu1 %v4620_v34, %s4234_s3 }
 0x61f   : > { %1582 = vrot.lane.b32.xlu0 %v4612_v24, %s4234_s3 }
 0x623   : > { %2159 = vrot.lane.b32.xlu0 %v4639_v47, %s4236_s23  ;;  %v1549_v47 = vsel %vm1096_vm1, %v4859_v30, 0.0 }
 0x627   : > { %2155 = vrot.lane.b32.xlu0 %v4630_v41, %s4236_s23  ;;  %v1543_v41 = vsel %vm1096_vm1, %v4863_v5, 0.0 }
 0x62b   : > { %2145 = vrot.lane.b32.xlu0 %v4605_v62, %s4236_s23 }
 0x62f   : > { %2149 = vrot.lane.b32.xlu0 %v4663_v53, %s4236_s23 }
 0x63a   : > { %1550 = vadd.xlane.f32.xlu1 %v1549_v47 }
 0x63e   : > { %1544 = vadd.xlane.f32.xlu1 %v1543_v41 }
 0x64f   : > { %1576 = vrot.lane.b32.xlu1 %v4628_v40, %s4234_s3 }
 0x653   : > { %2157 = vrot.lane.b32.xlu1 %v4622_v37, %s4236_s23 }
 0x657   : > { %2153 = vrot.lane.b32.xlu1 %v4636_v45, %s4236_s23 }
 0x65b   : > { %2147 = vrot.lane.b32.xlu1 %v4651_v50, %s4236_s23 }
 0x65f   : > { %2151 = vrot.lane.b32.xlu1 %v4665_v54, %s4236_s23 }
 0x670   : > { %v3366_v62 = vpop.f32.mrf.mxu1 }
 0x672   : > { %v1239_v53 = vpop.f32.mrf.mxu1 }
 0x674   : > { %v3367_v59 = vpop.f32.mrf.mxu1 }
 0x675   : > { %v1271_v28 = vpack.c.bf16 %v3367_v59, %v3366_v62 }
 0x676   : > { %v1242_v17 = vpop.f32.mrf.mxu1 }
 0x677   : > { %v1270_v26 = vpack.c.bf16 %v1242_v17, %v1239_v53 }
 0x678   : > { %v3370_v7 = vpop.f32.mrf.mxu1 }
 0x679   : > { %3376 = vmatprep.mubr.msk.bf16.mxu1 %vm1006_vm0, %v1270_v26 }
 0x67a   : > { %v1255_v8 = vpop.f32.mrf.mxu1  ;;  %3377 = vmatmul.mubr.msk.bf16.vlgmr.msra.gmra.mxu1 %vm1006_vm0, %v1271_v28 }
 0x67c   : > { %v3371_v37 = vpop.f32.mrf.mxu1 }
 0x67d   : > { %v1273_v32 = vpack.c.bf16 %v3371_v37, %v3370_v7 }
 0x67e   : > { %v1258_v45 = vpop.f32.mrf.mxu1 }
 0x67f   : > { %v1272_v31 = vpack.c.bf16 %v1258_v45, %v1255_v8 }
 0x681   : > { %3380 = vmatprep.mubr.msk.bf16.mxu1 %vm1006_vm0, %v1272_v31 }
 0x682   : > { %3381 = vmatmul.mubr.msk.bf16.gmra.mxu1 %vm1006_vm0, %v1273_v32  ;;  %v1536_v50 = vpop.xlane.xlu0 %1535 }
 0x686   : > { %v1530_v54 = vpop.xlane.xlu0 %1529  ;;  %v1539_v33 = vpop.xlane.xlu1 %1538 }
 0x687   : > { %3878 = vrcp.f32 %v1530_v54  ;;  %v3785_v54 = vld [vmem:[%s4490_s10 + $0x9c] ss:$24 sps:$4 sm:$0xff]  }
 0x689   : > { %v4881_v35 = vpop.f32.mrf.mxu0 }
 0x68a   : > { %v1533_v14 = vpop.xlane.xlu1 %1532  ;;  %v1873_v39 = vsel %vm1096_vm1, %v4881_v35, -inf }
 0x68b   : > { %3880 = vrcp.f32 %v1533_v14  ;;  %v4883_v15 = vpop.f32.mrf.mxu0 }
 0x68c   : > { %v1867_v36 = vsel %vm1096_vm1, %v4883_v15, -inf  ;;  %3882 = vrcp.f32 %v1539_v33  ;;  %v3786_v33 = vld [vmem:[%s4490_s10 + $0x6c] ss:$24 sps:$4 sm:$0xff]  }
 0x68d   : > { %1868 = vmax.xlane.f32.xlu0 %v1867_v36  ;;  %v4887_v13 = vpop.f32.mrf.mxu0  ;;  %3884 = vrcp.f32 %v1536_v50 }
 0x68e   : > { %v1548_v38 = vpop.xlane.xlu0 %1547  ;;  %v1876_v11 = vsel %vm1096_vm1, %v4887_v13, -inf  ;;  %v1581_v49 = vpop.permute.xlu1 %1580 }
 0x68f   : > { %v4889_v3 = vpop.f32.mrf.mxu0 }
 0x690   : > { %v1870_v60 = vsel %vm1096_vm1, %v4889_v3, -inf }
 0x691   : > { %1874 = vmax.xlane.f32.xlu0 %v1873_v39  ;;  %v4895_v42 = vpop.f32.mrf.mxu0  ;;  %1871 = vmax.xlane.f32.xlu1 %v1870_v60 }
 0x692   : > { %v1542_v44 = vpop.xlane.xlu0 %1541  ;;  %v1885_v56 = vsel %vm1096_vm1, %v4895_v42, -inf  ;;  %v1579_v2 = vpop.permute.xlu1 %1578 }
 0x693   : > { %v4897_v4 = vpop.f32.mrf.mxu0 }
 0x694   : > { %v3879_v48 = vpop.eup %3878  ;;  %v1879_v51 = vsel %vm1096_vm1, %v4897_v4, -inf }
 0x695   : > { %1877 = vmax.xlane.f32.xlu0 %v1876_v11  ;;  %v4901_v46 = vpop.f32.mrf.mxu0  ;;  %v1560_v19 = vmul.f32 %v3879_v48, %v4823_v55 }
 0x696   : > { %v1583_v21 = vpop.permute.xlu0 %1582  ;;  %v1888_v1 = vsel %vm1096_vm1, %v4901_v46, -inf }
 0x697   : > { %3400 = vmatprep.subr.bf16.mxu1 %v1583_v21  ;;  %v4903_v18 = vpop.f32.mrf.mxu0 }
 0x698   : > { %v3881_v12 = vpop.eup %3880  ;;  %3401 = vmatpush3.bf16.msra.mxu1 %v1583_v21  ;;  %v1882_v22 = vsel %vm1096_vm1, %v4903_v18, -inf }
 0x699   : > { %1880 = vmax.xlane.f32.xlu0 %v1879_v51  ;;  %1883 = vmax.xlane.f32.xlu1 %v1882_v22  ;;  %v1561_v52 = vmul.f32 %v3881_v12, %v4831_v57  ;;  %v3883_v9 = vpop.eup %3882 }
 0x69a   : > { %3402 = vmatprep.subr.bf16.mxu1 %v1581_v49  ;;  %v2160_v25 = vpop.permute.xlu0 %2159  ;;  %v3885_v16 = vpop.eup %3884  ;;  %v1563_v43 = vmul.f32 %v3883_v9, %v4825_v27 }
 0x69b   : > { %v2183_v20 = vsel %vm1006_vm0, %v2160_v25, 0  ;;  %3592 = vmatprep.subr.msk.bf16.mxu0 %vm1006_vm0, %v2160_v25  ;;  %v1568_v58 = vpack.c.bf16 %v1561_v52, %v1560_v19  ;;  %v1562_v41 = vmul.f32 %v3885_v16, %v4819_v23 }
 0x69c   : > { %3403 = vmatpush3.bf16.msra.mxu1 %v1581_v49  ;;  %3473 = vmatpush3.bf16.xpose.msra.mxu0 %v2183_v20 }
 0x69d   : > { %1886 = vmax.xlane.f32.xlu0 %v1885_v56  ;;  %1889 = vmax.xlane.f32.xlu1 %v1888_v1  ;;  %v1569_v62 = vpack.c.bf16 %v1563_v43, %v1562_v41 }
 0x69e   : > { %3404 = vmatprep.subr.bf16.mxu1 %v1579_v2  ;;  %3408 = vmatprep.mubr.msk.bf16.mxu1 %vm1096_vm1, %v1568_v58  ;;  %v2156_v55 = vpop.permute.xlu0 %2155 }
 0x69f   : > { %v2177_v45 = vsel %vm1006_vm0, %v2156_v55, 0 }
 0x6a0   : > { %3405 = vmatpush3.bf16.msra.mxu1 %v1579_v2 }
 0x6a2   : > { %v2146_v57 = vpop.permute.xlu0 %2145 }
 0x6a3   : > { %3480 = vmatprep.mubr.msk.bf16.mxu0 %vm1006_vm0, %v2146_v57 }
 0x6c3   : > { %v1551_v6 = vpop.xlane.xlu1 %1550 }
 0x6c4   : > { %3886 = vrcp.f32 %v1551_v6 }
 0x6c5   : > { %3888 = vrcp.f32 %v1542_v44 }
 0x6c6   : > { %3890 = vrcp.f32 %v1548_v38 }
 0x6c7   : > { %v1545_v10 = vpop.xlane.xlu1 %1544 }
 0x6c8   : > { %3892 = vrcp.f32 %v1545_v10 }
 0x6cb   : > { %v1577_v47 = vpop.permute.xlu1 %1576 }
 0x6cc   : > { %3406 = vmatprep.subr.bf16.mxu1 %v1577_v47 }
 0x6cd   : > { %3407 = vmatpush3.bf16.msra.mxu1 %v1577_v47 }
 0x6ce   : > { %3416 = vmatprep.subr.bf16.mxu1 %v3785_v54 }
 0x6cf   : > { %v2158_v53 = vpop.permute.xlu1 %2157 }
 0x6d0   : > { %v2180_v59 = vsel %vm1006_vm0, %v2158_v53, 0  ;;  %3409 = vmatmul.mubr.msk.bf16.vlgmr.msra.gmra.mxu1 %vm1096_vm1, %v1569_v62  ;;  %3593 = vmatprep.subr.msk.bf16.mxu0 %vm1006_vm0, %v2158_v53 }
 0x6d1   : > { %3475 = vmatpush3.bf16.xpose.msra.mxu0 %v2180_v59  ;;  %v3887_v17 = vpop.eup %3886  ;;  %3417 = vmatpush3.bf16.msra.mxu1 %v3785_v54 }
 0x6d2   : > { %3594 = vmatprep.subr.msk.bf16.mxu0 %vm1006_vm0, %v2156_v55  ;;  %v3889_v26 = vpop.eup %3888  ;;  %v1567_v7 = vmul.f32 %v3887_v17, %v4859_v30  ;;  %3418 = vmatprep.subr.bf16.mxu1 %v3786_v33 }
 0x6d3   : > { %v3891_v28 = vpop.eup %3890  ;;  %v1564_v23 = vmul.f32 %v3889_v26, %v4839_v63  ;;  %v2154_v32 = vpop.permute.xlu1 %2153 }
 0x6d4   : > { %v1566_v37 = vmul.f32 %v3891_v28, %v4835_v61  ;;  %v2174_v63 = vsel %vm1006_vm0, %v2154_v32, 0 }
 0x6d5   : > { %v3893_v27 = vpop.eup %3892  ;;  %3419 = vmatpush3.bf16.msra.mxu1 %v3786_v33 }
 0x6d6   : > { %v1565_v8 = vmul.f32 %v3893_v27, %v4863_v5  ;;  %v1571_v50 = vpack.c.bf16 %v1567_v7, %v1566_v37  ;;  %v2150_v5 = vpop.permute.xlu0 %2149 }
 0x6d7   : > { %v2148_v30 = vpop.permute.xlu1 %2147 }
 0x6d8   : > { %v1570_v31 = vpack.c.bf16 %v1565_v8, %v1564_v23 }
 0x6d9   : > { %3477 = vmatpush3.bf16.xpose.msra.mxu0 %v2177_v45 }
 0x6da   : > { %3412 = vmatprep.mubr.msk.bf16.mxu1 %vm1096_vm1, %v1570_v31  ;;  %3595 = vmatprep.subr.msk.bf16.mxu0 %vm1006_vm0, %v2154_v32 }
 0x6db   : > { %3413 = vmatmul.mubr.msk.bf16.gmra.mxu1 %vm1096_vm1, %v1571_v50  ;;  %v2152_v61 = vpop.permute.xlu1 %2151 }
 0x6e1   : > { %3479 = vmatpush3.bf16.xpose.msra.mxu0 %v2174_v63 }
 0x6e8   : > { %3481 = vmatmul.mubr.msk.bf16.vlgmr.msra.gmra.mxu0 %vm1006_vm0, %v2148_v30 }
 0x6e9   : > { %3484 = vmatprep.mubr.msk.bf16.mxu0 %vm1006_vm0, %v2150_v5 }
 0x6f0   : > { %3485 = vmatmul.mubr.msk.bf16.gmra.mxu0 %vm1006_vm0, %v2152_v61 }
 0x716   : > { %v1869_v14 = vpop.xlane.xlu0 %1868 }
 0x717   : > { %v1891_v36 = vsub.f32 %v4883_v15, %v1869_v14 }
 0x719   : > { %v1899_v44 = vmul.f32 1.442695, %v1891_v36 }
 0x71a   : > { %v1875_v38 = vpop.xlane.xlu0 %1874  ;;  %v1872_v39 = vpop.xlane.xlu1 %1871 }
 0x71b   : > { %v1893_v60 = vsub.f32 %v4881_v35, %v1875_v38  ;;  %v1892_v48 = vsub.f32 %v4889_v3, %v1872_v39 }
 0x71d   : > { %v1903_v11 = vmul.f32 1.442695, %v1893_v60  ;;  %v1901_v12 = vmul.f32 1.442695, %v1892_v48 }
 0x71e   : > { %v1878_v21 = vpop.xlane.xlu0 %1877 }
 0x71f   : > { %3894 = vpow2.f32 %v1903_v11  ;;  %v1894_v49 = vsub.f32 %v4887_v13, %v1878_v21 }
 0x720   : > { %3896 = vpow2.f32 %v1899_v44 }
 0x721   : > { %v1905_v51 = vmul.f32 1.442695, %v1894_v49 }
 0x722   : > { %v1881_v22 = vpop.xlane.xlu0 %1880  ;;  %v1884_v9 = vpop.xlane.xlu1 %1883 }
 0x723   : > { %3898 = vpow2.f32 %v1905_v51  ;;  %v1895_v15 = vsub.f32 %v4897_v4, %v1881_v22  ;;  %v1896_v43 = vsub.f32 %v4903_v18, %v1884_v9 }
 0x724   : > { %3900 = vpow2.f32 %v1901_v12 }
 0x725   : > { %v1907_v35 = vmul.f32 1.442695, %v1895_v15  ;;  %v1909_v41 = vmul.f32 1.442695, %v1896_v43 }
 0x726   : > { %v1887_v19 = vpop.xlane.xlu0 %1886  ;;  %v1890_v10 = vpop.xlane.xlu1 %1889 }
 0x727   : > { %v1897_v52 = vsub.f32 %v4895_v42, %v1887_v19  ;;  %v1898_v16 = vsub.f32 %v4901_v46, %v1890_v10 }
 0x729   : > { %v1911_v25 = vmul.f32 1.442695, %v1897_v52  ;;  %v1913_v47 = vmul.f32 1.442695, %v1898_v16 }
 0x72b   : > { %3902 = vpow2.f32 %v1911_v25 }
 0x72c   : > { %v4945_v20 = vpop.eup %3894  ;;  %3904 = vpow2.f32 %v1907_v35 }
 0x72d   : > { %v1921_v13 = vsel %vm1096_vm1, %v4945_v20, 0.0  ;;  %v4949_v3 = vpop.eup %3896  ;;  %3906 = vpow2.f32 %v1913_v47 }
 0x72e   : > { %1922 = vadd.xlane.f32.xlu0 %v1921_v13  ;;  %v1915_v4 = vsel %vm1096_vm1, %v4949_v3, 0.0  ;;  %3908 = vpow2.f32 %v1909_v41 }
 0x730   : > { %v4951_v58 = vpop.eup %3898 }
 0x731   : > { %v1924_v42 = vsel %vm1096_vm1, %v4951_v58, 0.0  ;;  %v4957_v56 = vpop.eup %3900 }
 0x732   : > { %1916 = vadd.xlane.f32.xlu0 %v1915_v4  ;;  %1925 = vadd.xlane.f32.xlu1 %v1924_v42  ;;  %v1918_v1 = vsel %vm1096_vm1, %v4957_v56, 0.0 }
 0x736   : > { %1919 = vadd.xlane.f32.xlu1 %v1918_v1 }
 0x738   : > { %v4961_v2 = vpop.eup %3902 }
 0x739   : > { %v1933_v55 = vsel %vm1096_vm1, %v4961_v2, 0.0  ;;  %v4965_v57 = vpop.eup %3904 }
 0x73a   : > { %1934 = vadd.xlane.f32.xlu0 %v1933_v55  ;;  %v1927_v6 = vsel %vm1096_vm1, %v4965_v57, 0.0  ;;  %v4977_v62 = vpop.eup %3906  ;;  %v4983_v17 = vpop.f32.mrf.mxu1 }
 0x73b   : > { %v1936_v53 = vsel %vm1096_vm1, %v4977_v62, 0.0  ;;  %v4981_v59 = vpop.eup %3908 }
 0x73c   : > { %v1930_v26 = vsel %vm1096_vm1, %v4981_v59, 0.0  ;;  %v4987_v46 = vpop.f32.mrf.mxu1 }
 0x73e   : > { %1928 = vadd.xlane.f32.xlu0 %v1927_v6  ;;  %v4989_v18 = vpop.f32.mrf.mxu1 }
 0x740   : > { %v4991_v28 = vpop.f32.mrf.mxu1 }
 0x742   : > { %v4993_v27 = vpop.f32.mrf.mxu1 }
 0x744   : > { %v4997_v7 = vpop.f32.mrf.mxu1 }
 0x746   : > { %v4999_v23 = vpop.f32.mrf.mxu1 }
 0x747   : > { %1963 = vrot.lane.b32.xlu1 %v4615_v29, %s4235_s11 }
 0x748   : > { %v5001_v8 = vpop.f32.mrf.mxu1 }
 0x74b   : > { %1961 = vrot.lane.b32.xlu1 %v4620_v34, %s4235_s11 }
 0x754   : > { %1965 = vrot.lane.b32.xlu0 %v4612_v24, %s4235_s11 }
 0x76f   : > { %1937 = vadd.xlane.f32.xlu1 %v1936_v53 }
 0x773   : > { %1931 = vadd.xlane.f32.xlu1 %v1930_v26 }
 0x784   : > { %1959 = vrot.lane.b32.xlu1 %v4628_v40, %s4235_s11 }
 0x790   : > { %v3410_v37 = vpop.f32.mrf.mxu1 }
 0x792   : > { %v1634_v45 = vpop.f32.mrf.mxu1 }
 0x794   : > { %v3411_v31 = vpop.f32.mrf.mxu1 }
 0x795   : > { %v1666_v63 = vpack.c.bf16 %v3411_v31, %v3410_v37 }
 0x796   : > { %v1637_v32 = vpop.f32.mrf.mxu1 }
 0x797   : > { %v1665_v50 = vpack.c.bf16 %v1637_v32, %v1634_v45 }
 0x799   : > { %3420 = vmatprep.mubr.msk.bf16.mxu1 %vm1006_vm0, %v1665_v50 }
 0x79a   : > { %3421 = vmatmul.mubr.msk.bf16.vlgmr.msra.gmra.mxu1 %vm1006_vm0, %v1666_v63 }
 0x79b   : > { %v3414_v30 = vpop.f32.mrf.mxu1 }
 0x79d   : > { %v1650_v5 = vpop.f32.mrf.mxu1 }
 0x79f   : > { %v3415_v61 = vpop.f32.mrf.mxu1 }
 0x7a0   : > { %v1668_v14 = vpack.c.bf16 %v3415_v61, %v3414_v30 }
 0x7a1   : > { %v1653_v54 = vpop.f32.mrf.mxu1 }
 0x7a2   : > { %v1667_v33 = vpack.c.bf16 %v1653_v54, %v1650_v5 }
 0x7a4   : > { %3424 = vmatprep.mubr.msk.bf16.mxu1 %vm1006_vm0, %v1667_v33 }
 0x7a5   : > { %3425 = vmatmul.mubr.msk.bf16.gmra.mxu1 %vm1006_vm0, %v1668_v14 }
 0x7a8   : > { %v5007_v36 = vpop.f32.mrf.mxu0 }
 0x7a9   : > { %v2256_v11 = vsel %vm1096_vm1, %v5007_v36, -inf }
 0x7aa   : > { %v5009_v38 = vpop.f32.mrf.mxu0 }
 0x7ab   : > { %v2250_v39 = vsel %vm1096_vm1, %v5009_v38, -inf }
 0x7ac   : > { %2251 = vmax.xlane.f32.xlu0 %v2250_v39  ;;  %v5013_v60 = vpop.f32.mrf.mxu0 }
 0x7ad   : > { %v2259_v12 = vsel %vm1096_vm1, %v5013_v60, -inf }
 0x7ae   : > { %v5015_v44 = vpop.f32.mrf.mxu0 }
 0x7af   : > { %v2253_v48 = vsel %vm1096_vm1, %v5015_v44, -inf }
 0x7b0   : > { %2257 = vmax.xlane.f32.xlu0 %v2256_v11  ;;  %v5021_v21 = vpop.f32.mrf.mxu0  ;;  %2254 = vmax.xlane.f32.xlu1 %v2253_v48 }
 0x7b1   : > { %v2268_v13 = vsel %vm1096_vm1, %v5021_v21, -inf }
 0x7b2   : > { %v5023_v49 = vpop.f32.mrf.mxu0 }
 0x7b3   : > { %v2262_v19 = vsel %vm1096_vm1, %v5023_v49, -inf }
 0x7b4   : > { %2260 = vmax.xlane.f32.xlu0 %v2259_v12  ;;  %v5027_v51 = vpop.f32.mrf.mxu0 }
 0x7b5   : > { %v2271_v4 = vsel %vm1096_vm1, %v5027_v51, -inf }
 0x7b6   : > { %v5029_v22 = vpop.f32.mrf.mxu0 }
 0x7b7   : > { %v1923_v15 = vpop.xlane.xlu0 %1922  ;;  %v2265_v52 = vsel %vm1096_vm1, %v5029_v22, -inf }
 0x7b8   : > { %2263 = vmax.xlane.f32.xlu0 %v2262_v19  ;;  %2266 = vmax.xlane.f32.xlu1 %v2265_v52 }
 0x7bb   : > { %v1917_v35 = vpop.xlane.xlu0 %1916  ;;  %v1926_v25 = vpop.xlane.xlu1 %1925 }
 0x7bc   : > { %2269 = vmax.xlane.f32.xlu0 %v2268_v13  ;;  %2272 = vmax.xlane.f32.xlu1 %v2271_v4  ;;  %3910 = vrcp.f32 %v1917_v35 }
 0x7bf   : > { %v1920_v42 = vpop.xlane.xlu1 %1919 }
 0x7c0   : > { %3912 = vrcp.f32 %v1920_v42  ;;  %v3787_v42 = vld [vmem:[%s4490_s10 + $0xfc] ss:$24 sps:$4 sm:$0xff]  }
 0x7c1   : > { %3914 = vrcp.f32 %v1926_v25 }
 0x7c2   : > { %3916 = vrcp.f32 %v1923_v15 }
 0x7c3   : > { %v1935_v1 = vpop.xlane.xlu0 %1934  ;;  %v1964_v9 = vpop.permute.xlu1 %1963 }
 0x7c7   : > { %v1929_v55 = vpop.xlane.xlu0 %1928  ;;  %v1962_v53 = vpop.permute.xlu1 %1961 }
 0x7c9   : > { %v3911_v6 = vpop.eup %3910 }
 0x7ca   : > { %v1947_v43 = vmul.f32 %v3911_v6, %v4949_v3 }
 0x7cb   : > { %v1966_v10 = vpop.permute.xlu0 %1965 }
 0x7cc   : > { %3444 = vmatprep.subr.bf16.mxu1 %v1966_v10 }
 0x7cd   : > { %v3913_v16 = vpop.eup %3912  ;;  %3445 = vmatpush3.bf16.msra.mxu1 %v1966_v10 }
 0x7ce   : > { %3446 = vmatprep.subr.bf16.mxu1 %v1964_v9  ;;  %v1948_v47 = vmul.f32 %v3913_v16, %v4957_v56  ;;  %v3915_v37 = vpop.eup %3914 }
 0x7cf   : > { %v3917_v31 = vpop.eup %3916  ;;  %v1950_v3 = vmul.f32 %v3915_v37, %v4951_v58 }
 0x7d0   : > { %v1955_v41 = vpack.c.bf16 %v1948_v47, %v1947_v43  ;;  %v1949_v32 = vmul.f32 %v3917_v31, %v4945_v20  ;;  %v5076_v47 = vld [vmem:[%s304_s30] sm:$0xff]  ;;  %v3976_v31 = vld [vmem:[#allocation2 + $0x30] sm:$0xff] }
 0x7d1   : > { %3447 = vmatpush3.bf16.msra.mxu1 %v1964_v9 }
 0x7d2   : > { %3448 = vmatprep.subr.bf16.mxu1 %v1962_v53  ;;  %3452 = vmatprep.mubr.msk.bf16.mxu1 %vm1096_vm1, %v1955_v41  ;;  %v1956_v50 = vpack.c.bf16 %v1950_v3, %v1949_v32 }
 0x7d5   : > { %3449 = vmatpush3.bf16.msra.mxu1 %v1962_v53 }
 0x7f8   : > { %v1938_v26 = vpop.xlane.xlu1 %1937 }
 0x7f9   : > { %3918 = vrcp.f32 %v1938_v26  ;;  %v3975_v26 = vld [vmem:[#allocation2 + $0x18] sm:$0xff] }
 0x7fa   : > { %3920 = vrcp.f32 %v1929_v55 }
 0x7fb   : > { %3922 = vrcp.f32 %v1935_v1 }
 0x7fc   : > { %v1932_v45 = vpop.xlane.xlu1 %1931 }
 0x7fd   : > { %3924 = vrcp.f32 %v1932_v45 }
 0x800   : > { %v1960_v56 = vpop.permute.xlu1 %1959 }
 0x801   : > { %3450 = vmatprep.subr.bf16.mxu1 %v1960_v56 }
 0x802   : > { %3451 = vmatpush3.bf16.msra.mxu1 %v1960_v56 }
 0x803   : > { %3460 = vmatprep.subr.bf16.mxu1 %v3787_v42 }
 0x805   : > { %3453 = vmatmul.mubr.msk.bf16.vlgmr.msra.gmra.mxu1 %vm1096_vm1, %v1956_v50 }
 0x806   : > { %v3919_v63 = vpop.eup %3918  ;;  %3461 = vmatpush3.bf16.msra.mxu1 %v3787_v42 }
 0x807   : > { %v3921_v30 = vpop.eup %3920  ;;  %v1954_v54 = vmul.f32 %v3919_v63, %v4977_v62  ;;  %v3977_v63 = vld [vmem:[#allocation2 + $0x10] sm:$0xff] }
 0x808   : > { %v3923_v5 = vpop.eup %3922  ;;  %v1951_v33 = vmul.f32 %v3921_v30, %v4965_v57 }
 0x809   : > { %v1953_v58 = vmul.f32 %v3923_v5, %v4961_v2 }
 0x80a   : > { %v3925_v61 = vpop.eup %3924 }
 0x80b   : > { %v1952_v14 = vmul.f32 %v3925_v61, %v4981_v59  ;;  %v1958_v11 = vpack.c.bf16 %v1954_v54, %v1953_v58  ;;  %v3978_v54 = vld [vmem:[#allocation2] sm:$0xff] }
 0x80d   : > { %v1957_v39 = vpack.c.bf16 %v1952_v14, %v1951_v33 }
 0x80f   : > { %3456 = vmatprep.mubr.msk.bf16.mxu1 %vm1096_vm1, %v1957_v39 }
 0x810   : > { %3457 = vmatmul.mubr.msk.bf16.gmra.mxu1 %vm1096_vm1, %v1958_v11 }
 0x835   : > { %v2252_v20 = vpop.xlane.xlu0 %2251 }
 0x836   : > { %v2274_v48 = vsub.f32 %v5009_v38, %v2252_v20 }
 0x838   : > { %v2282_v62 = vmul.f32 1.442695, %v2274_v48 }
 0x839   : > { %v2258_v12 = vpop.xlane.xlu0 %2257  ;;  %v2255_v15 = vpop.xlane.xlu1 %2254 }
 0x83a   : > { %v2276_v19 = vsub.f32 %v5007_v36, %v2258_v12  ;;  %v2275_v59 = vsub.f32 %v5015_v44, %v2255_v15 }
 0x83c   : > { %v2286_v57 = vmul.f32 1.442695, %v2276_v19  ;;  %v2284_v35 = vmul.f32 1.442695, %v2275_v59 }
 0x83d   : > { %v2261_v52 = vpop.xlane.xlu0 %2260 }
 0x83e   : > { %3926 = vpow2.f32 %v2286_v57  ;;  %v2277_v2 = vsub.f32 %v5013_v60, %v2261_v52  ;;  %v3788_v60 = vld [vmem:[%s4490_s10 + $0xcc] ss:$24 sps:$4 sm:$0xff]  }
 0x83f   : > { %3928 = vpow2.f32 %v2282_v62  ;;  %3462 = vmatprep.subr.bf16.mxu1 %v3788_v60  ;;  %v3980_v57 = vld [vmem:[#allocation2 + $0x8] sm:$0xff] }
 0x840   : > { %v2288_v25 = vmul.f32 1.442695, %v2277_v2  ;;  %3463 = vmatpush3.bf16.msra.mxu1 %v3788_v60 }
 0x841   : > { %v2264_v13 = vpop.xlane.xlu0 %2263 }
 0x842   : > { %3930 = vpow2.f32 %v2288_v25  ;;  %v2278_v38 = vsub.f32 %v5023_v49, %v2264_v13  ;;  %v988_v49 = vsub.s32 5, %v4578_v0 }
 0x843   : > { %3932 = vpow2.f32 %v2284_v35 }
 0x844   : > { %v2290_v1 = vmul.f32 1.442695, %v2278_v38  ;;  %v5079_v41 = vrot.slane %v5076_v47, %v988_v49 }
 0x845   : > { %v2270_v4 = vpop.xlane.xlu0 %2269 }
 0x846   : > { %v2280_v36 = vsub.f32 %v5021_v21, %v2270_v4  ;;  %v992_v37 = vadd.f32 %v3975_v26, %v5079_v41  ;;  %v990_v3 = vadd.f32 %v3976_v31, %v5079_v41  ;;  %v993_v30 = vadd.f32 %v3977_v63, %v5079_v41 }
 0x847   : > { %v991_v33 = vadd.f32 %v3978_v54, %v5079_v41  ;;  %v994_v59 = vadd.f32 %v3980_v57, %v5079_v41 }
 0x848   : > { %v2294_v55 = vmul.f32 1.442695, %v2280_v36  ;;  %v1361_v50 = vadd.f32 %v4983_v17, %v992_v37  ;;  %v1359_v61 = vadd.f32 %v4987_v46, %v990_v3  ;;  %v1362_v11 = vadd.f32 %v4989_v18, %v993_v30  ;;  %v3979_v46 = vld [vmem:[#allocation2 + $0x28] sm:$0xff]  ;;  %v3981_v18 = vld [vmem:[#allocation2 + $0x38] sm:$0xff] }
 0x849   : > { %v1360_v48 = vadd.f32 %v4991_v28, %v991_v33  ;;  %v996_v15 = vadd.f32 %v3979_v46, %v5079_v41  ;;  %v997_v2 = vadd.f32 %v3981_v18, %v5079_v41  ;;  %v1363_v25 = vadd.f32 %v4997_v7, %v994_v59  ;;  %v3749_v18 = vld [vmem:[%s4490_s10 + $0x15c] ss:$24 sps:$4 sm:$0xff]  }
 0x84a   : > { %3934 = vpow2.f32 %v2294_v55 }
 0x84b   : > { %v5059_v44 = vpop.eup %3926  ;;  %3936 = vpow2.f32 %v2290_v1  ;;  %v1365_v52 = vadd.f32 %v4993_v27, %v996_v15  ;;  %v1366_v38 = vadd.f32 %v4999_v23, %v997_v2  ;;  %v2267_v27 = vpop.xlane.xlu1 %2266 }
 0x84c   : > { %v2304_v6 = vsel %vm1096_vm1, %v5059_v44, 0.0  ;;  %v5063_v9 = vpop.eup %3928 }
 0x84d   : > { %2305 = vadd.xlane.f32.xlu0 %v2304_v6  ;;  %v2298_v10 = vsel %vm1096_vm1, %v5063_v9, 0.0 }
 0x84f   : > { %v5066_v21 = vpop.eup %3930  ;;  %v2273_v1 = vpop.xlane.xlu1 %2272 }
 0x850   : > { %v2307_v16 = vsel %vm1096_vm1, %v5066_v21, 0.0  ;;  %v5072_v43 = vpop.eup %3932  ;;  %v2281_v7 = vsub.f32 %v5027_v51, %v2273_v1 }
 0x851   : > { %2299 = vadd.xlane.f32.xlu0 %v2298_v10  ;;  %2308 = vadd.xlane.f32.xlu1 %v2307_v16  ;;  %v2301_v53 = vsel %vm1096_vm1, %v5072_v43, 0.0 }
 0x852   : > { %v2296_v55 = vmul.f32 1.442695, %v2281_v7 }
 0x854   : > { %3938 = vpow2.f32 %v2296_v55 }
 0x855   : > { %2302 = vadd.xlane.f32.xlu1 %v2301_v53 }
 0x857   : > { %v5084_v45 = vpop.eup %3934 }
 0x858   : > { %v2316_v56 = vsel %vm1096_vm1, %v5084_v45, 0.0  ;;  %v5089_v32 = vpop.eup %3936 }
 0x859   : > { %2317 = vadd.xlane.f32.xlu0 %v2316_v56  ;;  %v2310_v39 = vsel %vm1096_vm1, %v5089_v32, 0.0 }
 0x85a   : > { %v3422_v5 = vpop.f32.mrf.mxu1 }
 0x85b   : > { %v5095_v14 = vadd.f32 %v3422_v5, %v1361_v50 }
 0x85c   : > { %v1723_v58 = vpop.f32.mrf.mxu1 }
 0x85d   : > { %v5100_v20 = vadd.f32 %v1723_v58, %v1359_v61  ;;  %2311 = vadd.xlane.f32.xlu0 %v2310_v39 }
 0x85e   : > { %v3423_v17 = vpop.f32.mrf.mxu1 }
 0x85f   : > { %v5103_v12 = vadd.f32 %v3423_v17, %v1362_v11 }
 0x860   : > { %v1726_v19 = vpop.f32.mrf.mxu1 }
 0x861   : > { %v5106_v62 = vadd.f32 %v1726_v19, %v1360_v48  ;;  %v5127_v23 = vpop.eup %3938 }
 0x862   : > { %v2319_v6 = vsel %vm1096_vm1, %v5127_v23, 0.0 }
 0x865   : > { %v3426_v35 = vpop.f32.mrf.mxu1 }
 0x866   : > { %v5112_v28 = vadd.f32 %v3426_v35, %v1365_v52  ;;  %2346 = vrot.lane.b32.xlu1 %v4615_v29, %s4236_s23  ;;  %v2279_v29 = vsub.f32 %v5029_v22, %v2267_v27 }
 0x867   : > { %v1739_v13 = vpop.f32.mrf.mxu1 }
 0x868   : > { %v5117_v4 = vadd.f32 %v1739_v13, %v1363_v25  ;;  %v2292_v60 = vmul.f32 1.442695, %v2279_v29 }
 0x869   : > { %v3427_v36 = vpop.f32.mrf.mxu1 }
 0x86a   : > { %v5119_v42 = vadd.f32 %v3427_v36, %v1366_v38  ;;  %2344 = vrot.lane.b32.xlu1 %v4620_v34, %s4236_s23  ;;  %3940 = vpow2.f32 %v2292_v60  ;;  %v3789_v60 = vld [vmem:[%s4490_s10 + $0x12c] ss:$24 sps:$4 sm:$0xff]  }
 0x873   : > { %2348 = vrot.lane.b32.xlu0 %v4612_v24, %s4236_s23  ;;  %v5137_v24 = vpop.f32.mrf.mxu1 }
 0x877   : > { %v5131_v49 = vpop.eup %3940 }
 0x878   : > { %v2313_v34 = vsel %vm1096_vm1, %v5131_v49, 0.0 }
 0x88e   : > { %2320 = vadd.xlane.f32.xlu1 %v2319_v6 }
 0x892   : > { %2314 = vadd.xlane.f32.xlu1 %v2313_v34 }
 0x8a3   : > { %2342 = vrot.lane.b32.xlu1 %v4628_v40, %s4236_s23 }
 0x8c5   : > { %v3454_v51 = vpop.f32.mrf.mxu1 }
 0x8c7   : > { %v2017_v22 = vpop.f32.mrf.mxu1 }
 0x8c9   : > { %v3455_v10 = vpop.f32.mrf.mxu1 }
 0x8ca   : > { %v2049_v26 = vpack.c.bf16 %v3455_v10, %v3454_v51 }
 0x8cb   : > { %v2020_v16 = vpop.f32.mrf.mxu1 }
 0x8cc   : > { %v2048_v53 = vpack.c.bf16 %v2020_v16, %v2017_v22 }
 0x8ce   : > { %3464 = vmatprep.mubr.msk.bf16.mxu1 %vm1006_vm0, %v2048_v53 }
 0x8cf   : > { %3465 = vmatmul.mubr.msk.bf16.vlgmr.msra.gmra.mxu1 %vm1006_vm0, %v2049_v26 }
 0x8d0   : > { %v3458_v37 = vpop.f32.mrf.mxu1 }
 0x8d2   : > { %v2033_v31 = vpop.f32.mrf.mxu1 }
 0x8d4   : > { %v3459_v3 = vpop.f32.mrf.mxu1 }
 0x8d5   : > { %v2051_v30 = vpack.c.bf16 %v3459_v3, %v3458_v37 }
 0x8d6   : > { %v2306_v56 = vpop.xlane.xlu0 %2305  ;;  %v2036_v50 = vpop.f32.mrf.mxu1 }
 0x8d7   : > { %v2050_v63 = vpack.c.bf16 %v2036_v50, %v2033_v31 }
 0x8d9   : > { %3468 = vmatprep.mubr.msk.bf16.mxu1 %vm1006_vm0, %v2050_v63 }
 0x8da   : > { %v2300_v40 = vpop.xlane.xlu0 %2299  ;;  %3469 = vmatmul.mubr.msk.bf16.gmra.mxu1 %vm1006_vm0, %v2051_v30  ;;  %v2309_v5 = vpop.xlane.xlu1 %2308 }
 0x8db   : > { %3942 = vrcp.f32 %v2300_v40 }
 0x8de   : > { %v2303_v61 = vpop.xlane.xlu1 %2302 }
 0x8df   : > { %3944 = vrcp.f32 %v2303_v61 }
 0x8e0   : > { %3946 = vrcp.f32 %v2309_v5 }
 0x8e1   : > { %3948 = vrcp.f32 %v2306_v56 }
 0x8e2   : > { %v2318_v54 = vpop.xlane.xlu0 %2317  ;;  %v2347_v39 = vpop.permute.xlu1 %2346 }
 0x8e6   : > { %v2312_v33 = vpop.xlane.xlu0 %2311  ;;  %v2345_v19 = vpop.permute.xlu1 %2344 }
 0x8e8   : > { %v3943_v58 = vpop.eup %3942 }
 0x8e9   : > { %v2330_v48 = vmul.f32 %v3943_v58, %v5063_v9 }
 0x8ea   : > { %v2349_v11 = vpop.permute.xlu0 %2348 }
 0x8eb   : > { %3488 = vmatprep.subr.bf16.mxu1 %v2349_v11 }
 0x8ec   : > { %v3945_v17 = vpop.eup %3944  ;;  %3489 = vmatpush3.bf16.msra.mxu1 %v2349_v11 }
 0x8ed   : > { %3490 = vmatprep.subr.bf16.mxu1 %v2347_v39  ;;  %v2331_v46 = vmul.f32 %v3945_v17, %v5072_v43  ;;  %v3947_v59 = vpop.eup %3946  ;;  %v3982_v17 = vld [vmem:[#allocation2 + $0x20] sm:$0xff] }
 0x8ee   : > { %v3949_v9 = vpop.eup %3948  ;;  %v2333_v43 = vmul.f32 %v3947_v59, %v5066_v21 }
 0x8ef   : > { %v2338_v15 = vpack.c.bf16 %v2331_v46, %v2330_v48  ;;  %v2332_v35 = vmul.f32 %v3949_v9, %v5059_v44  ;;  %v995_v48 = vadd.f32 %v3982_v17, %v5079_v41 }
 0x8f0   : > { %3491 = vmatpush3.bf16.msra.mxu1 %v2347_v39 }
 0x8f1   : > { %3492 = vmatprep.subr.bf16.mxu1 %v2345_v19  ;;  %3496 = vmatprep.mubr.msk.bf16.mxu1 %vm1096_vm1, %v2338_v15  ;;  %v2339_v25 = vpack.c.bf16 %v2333_v43, %v2332_v35 }
 0x8f4   : > { %3493 = vmatpush3.bf16.msra.mxu1 %v2345_v19  ;;  %v1364_v19 = vadd.f32 %v5001_v8, %v995_v48 }
 0x8f6   : > { %v1759_v59 = vadd.f32 %v5137_v24, %v1364_v19 }
 0x917   : > { %v2321_v57 = vpop.xlane.xlu1 %2320 }
 0x918   : > { %3950 = vrcp.f32 %v2321_v57 }
 0x919   : > { %3952 = vrcp.f32 %v2312_v33 }
 0x91a   : > { %3954 = vrcp.f32 %v2318_v54 }
 0x91b   : > { %v2315_v52 = vpop.xlane.xlu1 %2314 }
 0x91c   : > { %3956 = vrcp.f32 %v2315_v52 }
 0x91f   : > { %v2343_v2 = vpop.permute.xlu1 %2342 }
 0x920   : > { %3494 = vmatprep.subr.bf16.mxu1 %v2343_v2 }
 0x921   : > { %3495 = vmatpush3.bf16.msra.mxu1 %v2343_v2 }
 0x922   : > { %3504 = vmatprep.subr.bf16.mxu1 %v3749_v18 }
 0x924   : > { %3497 = vmatmul.mubr.msk.bf16.vlgmr.msra.gmra.mxu1 %vm1096_vm1, %v2339_v25 }
 0x925   : > { %3505 = vmatpush3.bf16.msra.mxu1 %v3749_v18  ;;  %v3951_v13 = vpop.eup %3950 }
 0x926   : > { %v3953_v38 = vpop.eup %3952  ;;  %v2337_v1 = vmul.f32 %v3951_v13, %v5127_v23  ;;  %3506 = vmatprep.subr.bf16.mxu1 %v3789_v60 }
 0x927   : > { %v3955_v36 = vpop.eup %3954  ;;  %v2334_v7 = vmul.f32 %v3953_v38, %v5089_v32 }
 0x928   : > { %v2336_v44 = vmul.f32 %v3955_v36, %v5084_v45 }
 0x929   : > { %v3957_v27 = vpop.eup %3956  ;;  %3507 = vmatpush3.bf16.msra.mxu1 %v3789_v60 }
 0x92a   : > { %v2335_v21 = vmul.f32 %v3957_v27, %v5131_v49  ;;  %v2341_v55 = vpack.c.bf16 %v2337_v1, %v2336_v44 }
 0x92c   : > { %v2340_v29 = vpack.c.bf16 %v2335_v21, %v2334_v7 }
 0x92e   : > { %3500 = vmatprep.mubr.msk.bf16.mxu1 %vm1096_vm1, %v2340_v29 }
 0x92f   : > { %3501 = vmatmul.mubr.msk.bf16.gmra.mxu1 %vm1096_vm1, %v2341_v55 }
 0x98f   : > { %v3466_v6 = vpop.f32.mrf.mxu1 }
 0x990   : > { %v2139_v34 = vadd.f32 %v3466_v6, %v5095_v14 }
 0x991   : > { %v2106_v51 = vpop.f32.mrf.mxu1 }
 0x992   : > { %v2137_v23 = vadd.f32 %v2106_v51, %v5100_v20 }
 0x993   : > { %v3467_v32 = vpop.f32.mrf.mxu1 }
 0x994   : > { %v2140_v49 = vadd.f32 %v3467_v32, %v5103_v12 }
 0x995   : > { %v2109_v22 = vpop.f32.mrf.mxu1 }
 0x996   : > { %v2138_v45 = vadd.f32 %v2109_v22, %v5106_v62 }
 0x99a   : > { %v3470_v10 = vpop.f32.mrf.mxu1 }
 0x99b   : > { %v2143_v16 = vadd.f32 %v3470_v10, %v5112_v28 }
 0x99c   : > { %v2122_v53 = vpop.f32.mrf.mxu1 }
 0x99d   : > { %v2141_v26 = vadd.f32 %v2122_v53, %v5117_v4 }
 0x99e   : > { %v3471_v37 = vpop.f32.mrf.mxu1 }
 0x99f   : > { %v2144_v31 = vadd.f32 %v3471_v37, %v5119_v42 }
 0x9a0   : > { %v2125_v3 = vpop.f32.mrf.mxu1 }
 0x9a1   : > { %v2142_v18 = vadd.f32 %v2125_v3, %v1759_v59 }
 0x9e4   : > { %v3498_v14 = vpop.f32.mrf.mxu1 }
 0x9e6   : > { %v2400_v56 = vpop.f32.mrf.mxu1 }
 0x9e8   : > { %v3499_v50 = vpop.f32.mrf.mxu1 }
 0x9e9   : > { %v2432_v30 = vpack.c.bf16 %v3499_v50, %v3498_v14 }
 0x9ea   : > { %v2403_v20 = vpop.f32.mrf.mxu1 }
 0x9eb   : > { %v2431_v63 = vpack.c.bf16 %v2403_v20, %v2400_v56  ;;  %v3792_v20 = vld [vmem:[%s4490_s10 + $0x130] ss:$24 sps:$4 sm:$0xff]  }
 0x9ed   : > { %3508 = vmatprep.mubr.msk.bf16.mxu1 %vm1006_vm0, %v2431_v63 }
 0x9ee   : > { %3509 = vmatmul.mubr.msk.bf16.vlgmr.msra.gmra.mxu1 %vm1006_vm0, %v2432_v30  ;;  %v3794_v30 = vld [vmem:[%s4490_s10 + $0x100] ss:$24 sps:$4 sm:$0xff]  }
 0x9ef   : > { %v3502_v12 = vpop.f32.mrf.mxu1 }
 0x9f1   : > { %v2416_v62 = vpop.f32.mrf.mxu1 }
 0x9f3   : > { %v3503_v28 = vpop.f32.mrf.mxu1 }
 0x9f4   : > { %v2434_v4 = vpack.c.bf16 %v3503_v28, %v3502_v12  ;;  %v3796_v12 = vld [vmem:[%s4490_s10 + $0xd0] ss:$24 sps:$4 sm:$0xff]  }
 0x9f5   : > { %v2419_v40 = vpop.f32.mrf.mxu1  ;;  %v3800_v28 = vld [vmem:[%s4490_s10 + $0x70] ss:$24 sps:$4 sm:$0xff]  }
 0x9f6   : > { %v2433_v5 = vpack.c.bf16 %v2419_v40, %v2416_v62  ;;  %v3798_v62 = vld [vmem:[%s4490_s10 + $0xa0] ss:$24 sps:$4 sm:$0xff]  }
 0x9f7   : > { %v3802_v40 = vld [vmem:[%s4490_s10 + $0x40] ss:$24 sps:$4 sm:$0xff]  }
 0x9f8   : > { %3512 = vmatprep.mubr.msk.bf16.mxu1 %vm1006_vm0, %v2433_v5  ;;  %v3804_v5 = vld [vmem:[%s4490_s10 + $0x10] ss:$24 sps:$4 sm:$0xff]  }
 0x9f9   : > { %3513 = vmatmul.mubr.msk.bf16.gmra.mxu1 %vm1006_vm0, %v2434_v4  ;;  %v3806_v4 = vld [vmem:[%s4490_s10 + $0x164] ss:$24 sps:$4 sm:$0xff]  }
 0x9fa   : > { %3540 = vmatprep.subr.bf16.mxu1 %v3806_v4 }
 0x9fb   : > { %3541 = vmatpush3.bf16.msra.mxu1 %v3806_v4 }
 0xaae   : > { %v3510_v42 = vpop.f32.mrf.mxu1 }
 0xaaf   : > { %v2522_v39 = vadd.f32 %v3510_v42, %v2139_v34  ;;  %v3807_v42 = vld [vmem:[%s4490_s10 + $0x134] ss:$24 sps:$4 sm:$0xff]  }
 0xab0   : > { %v2489_v61 = vpop.f32.mrf.mxu1  ;;  %3542 = vmatprep.subr.bf16.mxu1 %v3807_v42 }
 0xab1   : > { %v2520_v54 = vadd.f32 %v2489_v61, %v2137_v23  ;;  %v3808_v61 = vld [vmem:[%s4490_s10 + $0x104] ss:$24 sps:$4 sm:$0xff]   ;;  %3543 = vmatpush3.bf16.msra.mxu1 %v3807_v42 }
 0xab2   : > { %v3511_v33 = vpop.f32.mrf.mxu1  ;;  %3544 = vmatprep.subr.bf16.mxu1 %v3808_v61 }
 0xab3   : > { %2528 = vadd.xlane.f32.xlu0 %v2520_v54  ;;  %v2523_v46 = vadd.f32 %v3511_v33, %v2140_v49  ;;  %v3810_v33 = vld [vmem:[%s4490_s10 + $0xa4] ss:$24 sps:$4 sm:$0xff]  }
 0xab4   : > { %v2492_v58 = vpop.f32.mrf.mxu1 }
 0xab5   : > { %v2521_v11 = vadd.f32 %v2492_v58, %v2138_v45  ;;  %3545 = vmatpush3.bf16.msra.mxu1 %v3808_v61  ;;  %v3811_v58 = vld [vmem:[%s4490_s10 + $0x74] ss:$24 sps:$4 sm:$0xff]  }
 0xab7   : > { %2530 = vadd.xlane.f32.xlu1 %v2521_v11  ;;  %2532 = vadd.xlane.f32.xlu0 %v2522_v39 }
 0xab9   : > { %v3514_v15 = vpop.f32.mrf.mxu1 }
 0xaba   : > { %v2526_v35 = vadd.f32 %v3514_v15, %v2143_v16 }
 0xabb   : > { %v2505_v57 = vpop.f32.mrf.mxu1  ;;  %2534 = vadd.xlane.f32.xlu0 %v2523_v46 }
 0xabc   : > { %v2524_v52 = vadd.f32 %v2505_v57, %v2141_v26  ;;  %v3790_v26 = vld [vmem:[%s4490_s10 + $0x160] ss:$24 sps:$4 sm:$0xff]  }
 0xabd   : > { %v3515_v9 = vpop.f32.mrf.mxu1  ;;  %3516 = vmatprep.subr.bf16.mxu0 %v3790_v26 }
 0xabe   : > { %v2527_v41 = vadd.f32 %v3515_v9, %v2144_v31  ;;  %3517 = vmatpush3.bf16.msra.mxu0 %v3790_v26 }
 0xabf   : > { %v2508_v43 = vpop.f32.mrf.mxu1  ;;  %2536 = vadd.xlane.f32.xlu0 %v2524_v52  ;;  %3518 = vmatprep.subr.bf16.mxu0 %v3792_v20 }
 0xac0   : > { %v2525_v2 = vadd.f32 %v2508_v43, %v2142_v18 }
 0xac2   : > { %2538 = vadd.xlane.f32.xlu1 %v2525_v2  ;;  %3519 = vmatpush3.bf16.msra.mxu0 %v3792_v20 }
 0xac3   : > { %2540 = vadd.xlane.f32.xlu0 %v2526_v35  ;;  %3520 = vmatprep.subr.bf16.mxu0 %v3794_v30 }
 0xac6   : > { %2542 = vadd.xlane.f32.xlu1 %v2527_v41  ;;  %3521 = vmatpush3.bf16.msra.mxu0 %v3794_v30 }
 0xac7   : > { %3522 = vmatprep.subr.bf16.mxu0 %v3796_v12 }
 0xaca   : > { %3523 = vmatpush3.bf16.msra.mxu0 %v3796_v12 }
 0xacb   : > { %3524 = vmatprep.subr.bf16.mxu0 %v3798_v62 }
 0xace   : > { %3525 = vmatpush3.bf16.msra.mxu0 %v3798_v62 }
 0xacf   : > { %3526 = vmatprep.subr.bf16.mxu0 %v3800_v28 }
 0xad2   : > { %3527 = vmatpush3.bf16.msra.mxu0 %v3800_v28 }
 0xad3   : > { %3528 = vmatprep.subr.bf16.mxu0 %v3802_v40 }
 0xad6   : > { %3529 = vmatpush3.bf16.msra.mxu0 %v3802_v40 }
 0xad7   : > { %3530 = vmatprep.subr.bf16.mxu0 %v3804_v5 }
 0xada   : > { %3531 = vmatpush3.bf16.msra.mxu0 %v3804_v5 }
 0xb3c   : > { %v2529_v25 = vpop.xlane.xlu0 %2528 }
 0xb3d   : > { %v2544_v13 = vmul.f32 0.0078125, %v2529_v25  ;;  %v2618_v25 = vsub.s32 6, %v4578_v0 }
 0xb3f   : > { %v5171_v38 = vsub.f32 %v2520_v54, %v2544_v13  ;;  %v3809_v54 = vld [vmem:[%s4490_s10 + $0xd4] ss:$24 sps:$4 sm:$0xff]  }
 0xb40   : > { %v2531_v8 = vpop.xlane.xlu1 %2530  ;;  %v2533_v36 = vpop.xlane.xlu0 %2532  ;;  %3546 = vmatprep.subr.bf16.mxu1 %v3809_v54 }
 0xb41   : > { %v2545_v27 = vmul.f32 0.0078125, %v2531_v8  ;;  %v2546_v1 = vmul.f32 0.0078125, %v2533_v36  ;;  %v2560_v24 = vmul.f32 %v5171_v38, %v5171_v38  ;;  %3547 = vmatpush3.bf16.msra.mxu1 %v3809_v54 }
 0xb42   : > { %3548 = vmatprep.subr.bf16.mxu1 %v3810_v33 }
 0xb43   : > { %v5175_v7 = vsub.f32 %v2521_v11, %v2545_v27  ;;  %v5177_v21 = vsub.f32 %v2522_v39, %v2546_v1  ;;  %2568 = vadd.xlane.f32.xlu0 %v2560_v24 }
 0xb44   : > { %v2535_v44 = vpop.xlane.xlu0 %2534 }
 0xb45   : > { %v2547_v29 = vmul.f32 0.0078125, %v2535_v44  ;;  %v2561_v55 = vmul.f32 %v5175_v7, %v5175_v7  ;;  %v2562_v60 = vmul.f32 %v5177_v21, %v5177_v21  ;;  %3549 = vmatpush3.bf16.msra.mxu1 %v3810_v33 }
 0xb46   : > { %3550 = vmatprep.subr.bf16.mxu1 %v3811_v58 }
 0xb47   : > { %v5183_v6 = vsub.f32 %v2523_v46, %v2547_v29  ;;  %2570 = vadd.xlane.f32.xlu1 %v2561_v55  ;;  %2572 = vadd.xlane.f32.xlu0 %v2562_v60  ;;  %v2619_v55 = vrot.slane %v5076_v47, %v2618_v25  ;;  %v2630_v60 = vsub.s32 7, %v4578_v0 }
 0xb48   : > { %v2537_v34 = vpop.xlane.xlu0 %2536 }
 0xb49   : > { %v2548_v51 = vmul.f32 0.0078125, %v2537_v34  ;;  %v2563_v23 = vmul.f32 %v5183_v6, %v5183_v6  ;;  %3551 = vmatpush3.bf16.msra.mxu1 %v3811_v58 }
 0xb4b   : > { %v5187_v32 = vsub.f32 %v2524_v52, %v2548_v51  ;;  %v2539_v49 = vpop.xlane.xlu1 %2538  ;;  %2574 = vadd.xlane.f32.xlu1 %v2563_v23 }
 0xb4c   : > { %v2549_v22 = vmul.f32 0.0078125, %v2539_v49  ;;  %v2541_v45 = vpop.xlane.xlu0 %2540 }
 0xb4d   : > { %v2550_v10 = vmul.f32 0.0078125, %v2541_v45  ;;  %v2564_v16 = vmul.f32 %v5187_v32, %v5187_v32 }
 0xb4e   : > { %v5191_v53 = vsub.f32 %v2525_v2, %v2549_v22 }
 0xb4f   : > { %v5194_v37 = vsub.f32 %v2526_v35, %v2550_v10  ;;  %v2543_v31 = vpop.xlane.xlu1 %2542  ;;  %2576 = vadd.xlane.f32.xlu0 %v2564_v16  ;;  %v2631_v10 = vrot.slane %v5076_v47, %v2630_v60 }
 0xb50   : > { %v2551_v3 = vmul.f32 0.0078125, %v2543_v31  ;;  %v2565_v14 = vmul.f32 %v5191_v53, %v5191_v53 }
 0xb51   : > { %v2566_v56 = vmul.f32 %v5194_v37, %v5194_v37 }
 0xb52   : > { %v5200_v50 = vsub.f32 %v2527_v41, %v2551_v3  ;;  %2578 = vadd.xlane.f32.xlu1 %v2565_v14 }
 0xb53   : > { %2580 = vadd.xlane.f32.xlu0 %v2566_v56 }
 0xb54   : > { %v2567_v63 = vmul.f32 %v5200_v50, %v5200_v50 }
 0xb56   : > { %2582 = vadd.xlane.f32.xlu1 %v2567_v63 }
 0xbcc   : > { %v2569_v39 = vpop.xlane.xlu0 %2568 }
 0xbcd   : > { %v2584_v11 = vmul.f32 0.0078125, %v2569_v39 }
 0xbcf   : > { %v2592_v17 = vadd.f32 1e-05, %v2584_v11 }
 0xbd0   : > { %v2571_v48 = vpop.xlane.xlu1 %2570  ;;  %v2573_v46 = vpop.xlane.xlu0 %2572 }
 0xbd1   : > { %3958 = vrsqrt.f32 %v2592_v17  ;;  %v2585_v15 = vmul.f32 0.0078125, %v2571_v48  ;;  %v2586_v19 = vmul.f32 0.0078125, %v2573_v46  ;;  %v3813_v48 = vld [vmem:[%s4490_s10 + $0x14] ss:$24 sps:$4 sm:$0xff]  }
 0xbd3   : > { %v2593_v57 = vadd.f32 1e-05, %v2585_v15  ;;  %v2594_v59 = vadd.f32 1e-05, %v2586_v19 }
 0xbd4   : > { %v2575_v52 = vpop.xlane.xlu1 %2574 }
 0xbd5   : > { %3960 = vrsqrt.f32 %v2593_v57  ;;  %v2587_v9 = vmul.f32 0.0078125, %v2575_v52 }
 0xbd6   : > { %3962 = vrsqrt.f32 %v2594_v59 }
 0xbd7   : > { %v2595_v18 = vadd.f32 1e-05, %v2587_v9 }
 0xbd8   : > { %v2577_v43 = vpop.xlane.xlu0 %2576 }
 0xbd9   : > { %3964 = vrsqrt.f32 %v2595_v18  ;;  %v2588_v2 = vmul.f32 0.0078125, %v2577_v43 }
 0xbdb   : > { %v2596_v35 = vadd.f32 1e-05, %v2588_v2  ;;  %v2579_v41 = vpop.xlane.xlu1 %2578 }
 0xbdc   : > { %v2589_v13 = vmul.f32 0.0078125, %v2579_v41  ;;  %v2581_v8 = vpop.xlane.xlu0 %2580 }
 0xbdd   : > { %3966 = vrsqrt.f32 %v2596_v35  ;;  %v2590_v36 = vmul.f32 0.0078125, %v2581_v8 }
 0xbde   : > { %v3959_v27 = vpop.eup %3958  ;;  %v2597_v1 = vadd.f32 1e-05, %v2589_v13 }
 0xbdf   : > { %v2598_v24 = vadd.f32 1e-05, %v2590_v36  ;;  %v2583_v44 = vpop.xlane.xlu1 %2582  ;;  %v2608_v29 = vmul.f32 %v3959_v27, %v5171_v38 }
 0xbe0   : > { %3968 = vrsqrt.f32 %v2597_v1  ;;  %v2591_v34 = vmul.f32 0.0078125, %v2583_v44 }
 0xbe1   : > { %3970 = vrsqrt.f32 %v2598_v24  ;;  %v2620_v45 = vmul.f32 %v2619_v55, %v2608_v29 }
 0xbe2   : > { %v3961_v51 = vpop.eup %3960  ;;  %v2599_v23 = vadd.f32 1e-05, %v2591_v34 }
 0xbe3   : > { %v3963_v49 = vpop.eup %3962  ;;  %v2609_v22 = vmul.f32 %v3961_v51, %v5175_v7  ;;  %v2632_v3 = vadd.f32 %v2631_v10, %v2620_v45 }
 0xbe4   : > { %v2610_v16 = vmul.f32 %v3963_v49, %v5177_v21  ;;  %3972 = vrsqrt.f32 %v2599_v23 }
 0xbe5   : > { %v2621_v26 = vmul.f32 %v2619_v55, %v2609_v22 }
 0xbe6   : > { %v3965_v38 = vpop.eup %3964  ;;  %v2622_v14 = vmul.f32 %v2619_v55, %v2610_v16 }
 0xbe7   : > { %v2611_v31 = vmul.f32 %v3965_v38, %v5183_v6  ;;  %v2633_v0 = vadd.f32 %v2631_v10, %v2621_v26 }
 0xbe8   : > { %v2634_v30 = vadd.f32 %v2631_v10, %v2622_v14 }
 0xbe9   : > { %v2640_v56 = vpack.c.bf16 %v2633_v0, %v2632_v3  ;;  %v2623_v20 = vmul.f32 %v2619_v55, %v2611_v31 }
 0xbea   : > { %v3967_v63 = vpop.eup %3966 }
 0xbeb   : > { %3532 = vmatprep.mubr.bf16.mxu0 %v2640_v56  ;;  %v2635_v12 = vadd.f32 %v2631_v10, %v2623_v20  ;;  %v2612_v7 = vmul.f32 %v3967_v63, %v5187_v32 }
 0xbed   : > { %v3969_v62 = vpop.eup %3968  ;;  %v2641_v47 = vpack.c.bf16 %v2635_v12, %v2634_v30  ;;  %v2624_v40 = vmul.f32 %v2619_v55, %v2612_v7 }
 0xbee   : > { %v3971_v28 = vpop.eup %3970  ;;  %v2613_v21 = vmul.f32 %v3969_v62, %v5191_v53  ;;  %v3812_v53 = vld [vmem:[%s4490_s10 + $0x44] ss:$24 sps:$4 sm:$0xff]  }
 0xbef   : > { %3533 = vmatmul.mubr.bf16.vlgmr.msra.gmra.mxu0 %v2641_v47  ;;  %v2614_v6 = vmul.f32 %v3971_v28, %v5194_v37  ;;  %v2636_v42 = vadd.f32 %v2631_v10, %v2624_v40  ;;  %3552 = vmatprep.subr.bf16.mxu1 %v3812_v53 }
 0xbf0   : > { %v2625_v5 = vmul.f32 %v2619_v55, %v2613_v21  ;;  %3553 = vmatpush3.bf16.msra.mxu1 %v3812_v53 }
 0xbf1   : > { %v3973_v4 = vpop.eup %3972  ;;  %v2626_v33 = vmul.f32 %v2619_v55, %v2614_v6  ;;  %3554 = vmatprep.subr.bf16.mxu1 %v3813_v48 }
 0xbf2   : > { %v2637_v61 = vadd.f32 %v2631_v10, %v2625_v5  ;;  %v2615_v54 = vmul.f32 %v3973_v4, %v5200_v50 }
 0xbf3   : > { %v2638_v39 = vadd.f32 %v2631_v10, %v2626_v33 }
 0xbf4   : > { %v2642_v58 = vpack.c.bf16 %v2637_v61, %v2636_v42  ;;  %v2627_v32 = vmul.f32 %v2619_v55, %v2615_v54  ;;  %3555 = vmatpush3.bf16.msra.mxu1 %v3813_v48 }
 0xbf6   : > { %3536 = vmatprep.mubr.bf16.mxu0 %v2642_v58  ;;  %v2639_v11 = vadd.f32 %v2631_v10, %v2627_v32 }
 0xbf8   : > { %v2643_v17 = vpack.c.bf16 %v2639_v11, %v2638_v39 }
 0xbfa   : > { %3537 = vmatmul.mubr.bf16.gmra.mxu0 %v2643_v17 }
 0xcaf   : > { %v3534_v37 = vpop.f32.mrf.mxu0 }
 0xcb1   : > { %v2726_v46 = vpop.f32.mrf.mxu0 }
 0xcb3   : > { %v3535_v15 = vpop.f32.mrf.mxu0 }
 0xcb4   : > { %v2758_v50 = vpack.c.bf16 %v3535_v15, %v3534_v37 }
 0xcb5   : > { %v2729_v19 = vpop.f32.mrf.mxu0 }
 0xcb6   : > { %v2757_v57 = vpack.c.bf16 %v2729_v19, %v2726_v46 }
 0xcb8   : > { %3556 = vmatprep.mubr.bf16.mxu1 %v2757_v57 }
 0xcb9   : > { %3557 = vmatmul.mubr.bf16.vlgmr.msra.gmra.mxu1 %v2758_v50 }
 0xcba   : > { %v3538_v59 = vpop.f32.mrf.mxu0 }
 0xcbc   : > { %v2742_v52 = vpop.f32.mrf.mxu0 }
 0xcbe   : > { %v3539_v9 = vpop.f32.mrf.mxu0 }
 0xcbf   : > { %v2760_v2 = vpack.c.bf16 %v3539_v9, %v3538_v59 }
 0xcc0   : > { %v2745_v18 = vpop.f32.mrf.mxu0 }
 0xcc1   : > { %v2759_v43 = vpack.c.bf16 %v2745_v18, %v2742_v52 }
 0xcc3   : > { %3560 = vmatprep.mubr.bf16.mxu1 %v2759_v43 }
 0xcc4   : > { %3561 = vmatmul.mubr.bf16.gmra.mxu1 %v2760_v2 }
 0xd79   : > { %v3558_v35 = vpop.f32.mrf.mxu1 }
 0xd7a   : > { %v2836_v41 = vadd.f32 %v3558_v35, %v2634_v30 }
 0xd7b   : > { %v2827_v25 = vpop.f32.mrf.mxu1 }
 0xd7c   : > { %2860 = vst [vmem:[#allocation2 + $0x18] sm:$0xff] %v2836_v41  ;;  %v2828_v13 = vadd.f32 %v2827_v25, %v2632_v3 }
 0xd7d   : > { %v3559_v8 = vpop.f32.mrf.mxu1 }
 0xd7e   : > { %2858 = vst [vmem:[#allocation2 + $0x30] sm:$0xff] %v2828_v13  ;;  %v2839_v36 = vadd.f32 %v3559_v8, %v2635_v12 }
 0xd7f   : > { %v2830_v27 = vpop.f32.mrf.mxu1 }
 0xd80   : > { %2861 = vst [vmem:[#allocation2 + $0x10] sm:$0xff] %v2839_v36  ;;  %v2831_v1 = vadd.f32 %v2830_v27, %v2633_v0 }
 0xd82   : > { %2859 = vst [vmem:[#allocation2] sm:$0xff] %v2831_v1 }
 0xd84   : > { %v3562_v24 = vpop.f32.mrf.mxu1 }
 0xd85   : > { %v2852_v44 = vadd.f32 %v3562_v24, %v2638_v39 }
 0xd86   : > { %v2843_v29 = vpop.f32.mrf.mxu1 }
 0xd87   : > { %2864 = vst [vmem:[#allocation2 + $0x28] sm:$0xff] %v2852_v44  ;;  %v2844_v55 = vadd.f32 %v2843_v29, %v2636_v42 }
 0xd88   : > { %v3563_v60 = vpop.f32.mrf.mxu1 }
 0xd89   : > { %2862 = vst [vmem:[#allocation2 + $0x8] sm:$0xff] %v2844_v55  ;;  %v2855_v34 = vadd.f32 %v3563_v60, %v2639_v11  ;;  %2869 = sbr.rel (%p3148_p2) target bundleno = 3474 (0xd92), region = 64 }
 0xd8a   : > { %v2846_v51 = vpop.f32.mrf.mxu1 }
 0xd8b   : > { %2865 = vst [vmem:[#allocation2 + $0x38] sm:$0xff] %v2855_v34  ;;  %v2847_v23 = vadd.f32 %v2846_v51, %v2637_v61 }
 0xd8d   : > { %2863 = vst [vmem:[#allocation2 + $0x20] sm:$0xff] %v2847_v23 }
 0xd8e   : > { %2870 = vst [vmem:[%s4499_s13] sm:$0xff] %v2828_v13  ;;  %2871 = vst [vmem:[%s4499_s13 + $0x8] sm:$0xff] %v2831_v1 }
 0xd8f   : > { %2872 = vst [vmem:[%s4499_s13 + $0x10] sm:$0xff] %v2836_v41  ;;  %2873 = vst [vmem:[%s4499_s13 + $0x18] sm:$0xff] %v2839_v36 }
 0xd90   : > { %2874 = vst [vmem:[%s4499_s13 + $0x20] sm:$0xff] %v2844_v55  ;;  %2875 = vst [vmem:[%s4499_s13 + $0x28] sm:$0xff] %v2847_v23 }
 0xd91   : > { %2876 = vst [vmem:[%s4499_s13 + $0x30] sm:$0xff] %v2852_v44  ;;  %2877 = vst [vmem:[%s4499_s13 + $0x38] sm:$0xff] %v2855_v34 }
 0xd92 PF: > { %s3155_s24 = sshll.u32 %s4209_s25, 10  ;;  %s2892_s17 = sshll.u32 %s4499_s13, 4  ;;  %s5247_s17 = int_to_ptr.vmem [resolvable:$true] %s2892_s17 }
 0xd93   : > { %s5244_s29 = scalar_lea.hbm %s5316_s5, %s3155_s24  ;;  %s5251_s4 = scalar_lea.sflag [#allocation5], %s280_s15 }
 0xd94   : > { %s4093_s27 = scalar_lea.vmem %s5247_s17, 1024  ;;  %p5352_p3 = scmp.ne.s32.totalorder %s5342_s8, 0 }
 0xd95   : > { %p4094_p0 = scmp.ne.s32.totalorder %s5247_s17, %s4093_s27  ;;  %s4237_s25 = smov [#allocation10]  }
 0xd96   : > { %s4097_s16 = sshll.u32 %s4237_s25, 4  ;;  %s4098_s16 = int_to_ptr.vmem [resolvable:$false] %s4097_s16 }
 0xd97   : > { %p4095_p6 = pnand %p4094_p0, %p5352_p3  ;;  %s4099_s9 = scalar_lea.vmem %s4098_s16, 2048 }
 0xd98   : > { %p4100_p7 = scmp.lt.s32.totalorder %s5247_s17, %s4098_s16  ;;  %p4101_p4 = scmp.lt.s32.totalorder %s4099_s9, %s4093_s27 }
 0xd99   : > { %p4096_p5 = pneg %p4095_p6 }
 0xd9a   : > { %p4102_p12 = por %p4101_p4, %p4100_p7 }
 0xd9c   : > { %p4103_p9 = pnand %p4102_p12, %p4096_p5 }
 0xd9e   : > { %4106 = shalt.err (!%p4103_p9)
}
 0xd9f   : > { %s4107_s15 = scalar_lea.hbm %s5244_s29, 1024  ;;  %s4111_s30 = scalar_lea.hbm %s5316_s5, 2048 }
 0xda0   : > { %p4108_p13 = scmp.ne.s32.totalorder %s5244_s29, %s4107_s15  ;;  %p4112_p11 = scmp.lt.s32.totalorder %s5244_s29, %s5316_s5 }
 0xda1   : > { %p4113_p10 = scmp.lt.s32.totalorder %s4111_s30, %s4107_s15 }
 0xda2   : > { %p4109_p1 = pnand %p4108_p13, %p5352_p3 }
 0xda3   : > { %p4114_p2 = por %p4113_p10, %p4112_p11 }
 0xda4   : > { %p4110_p8 = pneg %p4109_p1 }
 0xda6   : > { %p4115_p0 = pnand %p4114_p2, %p4110_p8 }
 0xda8   : > { %4118 = shalt.err (!%p4115_p0)
}
 0xda9   : > { %s4238_s0 = smov 128   ;;  %s4239_s3 = smov 8  }
 0xdaa   : > { %3609 = dma.vmem_to_hbm [thread:$0]  (%p5352_p3), %s5247_s17, 1024, %s5244_s29, %s5251_s4, %s4238_s0, %s4238_s0, %s4239_s3  }
 0xdab PF: > { %p3632_p6 = scmp.ge.s32.totalorder %s4221_s28, 2  ;;  %s2907_s11 = sand.u32 1, %s4193_s21  }
 0xdac   : > { %p5353_p5 = scmp.ne.s32.totalorder %s5343_s18, 0  ;;  %s2908_s23 = scalar_lea.sflag [#allocation5], %s2907_s11 }
 0xdae   : > { %p3626_p7 = pnand %p3632_p6, %p5353_p5 }
 0xdb0   : > { %p3627_p4 = pneg %p3626_p7 }
 0xdb2   : > { %4176 = dma.done.wait (%p3627_p4), %s2908_s23, 1024  }
 0xdb3   : > { %4178 = vsyncadd (%p3627_p4), %s2908_s23, 4294966272  ;;  %s22_s28 = sadd.s32 1, %s4221_s28   ;;  %s5354_s24 = sld [smem:[#allocation19_spill]] }
 0xdb4   : > { %p19_p12 = scmp.ge.s32.totalorder %s22_s28, 6   ;;  %s5355_s8 = sld [smem:[#allocation15_spill]] }
 0xdb5   : > { %s5356_s23 = sld [smem:[#allocation20_spill]]  ;;  %s5360_s18 = smov %s4185_s19 }
 0xdb6   : > { %s5357_s25 = sld [smem:[#allocation16_spill]]  ;;  %s5361_s19 = smov %s4189_s20 }
 0xdb7   : > { %s5358_s14 = sld [smem:[#allocation17_spill]]  ;;  %s5363_s21 = smov %s4197_s22 }
 0xdb8   : > { %s5359_s27 = sld [smem:[#allocation18_spill]] }
 0xdb9   : > { %s5362_s20 = smov %s5354_s24  ;;  %s5365_s24 = smov %s4213_s26 }
 0xdba   : > { %s5364_s22 = smov %s5355_s8  ;;  %21 = sbr.rel (!%p19_p12) target bundleno = 14 (0xe), region = 119 }
 0xdbd   : > { %s5366_s26 = smov %s5358_s14 }
 0xdbf   :  { %2913 = vsyncpa [#allocation4], 1 }
 0xdc0   :  { %2915 = vsyncpa [#allocation4 + $0x1], 1 }
 0xdc1   :  { %2916 = vsyncpa [#allocation7], 1 }
 0xdc2   :  { %2917 = vsyncpa [#allocation5], 1 }
 0xdc3   :  { %2919 = vsyncpa [#allocation5 + $0x1], 1 }

</bundles_post_ra>
